<compile_context>
chip_gen: v5e
topology: v5e:2x2
jax: 0.10.0
libtpu: 0.0.40
codegen_flags: <defaults>
</compile_context>

<pallas_src>
import jax
import jax.numpy as jnp
from jax.experimental import pallas as pl
from jax.experimental.pallas import tpu as pltpu

IN_FEATURES = 1280      # fixed by MobileNetV2 (last conv produces 1280 channels)
NUM_CLASSES = 1000      # default num_classes of the module
TILE_N = 512            # 2 grid steps for C_pad=1024 -> low overhead, still >=2 tiles for v7x


def classifier_kernel(x_ref, w_ref, b_ref, o_ref):
    """y_tile = x @ W_tile + b_tile  (bf16 operands, f32 MXU accumulate, f32 out)."""
    # Dropout(p=0.2) is identity at inference time -> no-op in the kernel.
    acc = jnp.dot(x_ref[...], w_ref[...], preferred_element_type=jnp.float32)
    o_ref[...] = (acc + b_ref[...]).astype(o_ref.dtype)


def prepare_params(w, b, *, tile_n=TILE_N):
    """One-time parameter prep (keep this OUT of the jitted forward path).

    Args:
      w: (C, 1280) PyTorch-layout Linear weight (any float dtype)
      b: (C,) or (1, C) Linear bias
    Returns:
      w_t_pad: (1280, C_pad) bf16, zero-padded to a multiple of tile_n (lane-dense)
      b_pad:   (1, C_pad)    f32,  zero-padded to match
      num_classes: true C (for slicing the kernel output)
    """
    C, K = w.shape
    assert K == IN_FEATURES, f"expected in_features={IN_FEATURES}, got {K}"

    b = jnp.asarray(b)
    if b.ndim == 1:
        b = b.reshape(1, -1)
    assert b.shape == (1, C), f"bias shape {b.shape} incompatible with weight ({C}, {K})"

    C_pad = pl.cdiv(C, tile_n) * tile_n
    w_t = jnp.asarray(w).T                      # (K, C)
    if C_pad != C:
        w_t = jnp.pad(w_t, ((0, 0), (0, C_pad - C)))
        b = jnp.pad(b, ((0, 0), (0, C_pad - C)))

    return w_t.astype(jnp.bfloat16), b.astype(jnp.float32), C


def mobilenet_classifier_head(x, w_t_pad, b_pad, num_classes, *, tile_n=TILE_N):
    """
    Args:
      x:        (B, 1280) features from the bridging layers (any float dtype)
      w_t_pad:  (1280, C_pad) bf16 pre-padded, pre-transposed weight (prepare_params)
      b_pad:    (1, C_pad) f32 pre-padded bias
      num_classes: true number of classes C (<= C_pad)
    Returns:
      (B, C) float32 classification logits
    """
    B, K = x.shape
    Kw, C_pad = w_t_pad.shape
    assert K == Kw == IN_FEATURES
    assert C_pad % tile_n == 0 and b_pad.shape == (1, C_pad)

    # Only per-call cast is the tiny activation (a few KB); weight/bias already bf16/f32.
    x_bf16 = x.astype(jnp.bfloat16)

    grid = (C_pad // tile_n,)

    cost = pl.CostEstimate(
        flops=2 * B * K * C_pad,
        transcendentals=0,
        bytes_accessed=K * C_pad * 2 + B * K * 2 + C_pad * 4 + B * C_pad * 4,
    )

    out = pl.pallas_call(
        classifier_kernel,
        out_shape=jax.ShapeDtypeStruct((B, C_pad), jnp.float32),
        grid=grid,
        in_specs=[
            # x: same block index every step -> stays VMEM-resident, no re-DMA.
            pl.BlockSpec((B, K), lambda j: (0, 0)),
            # weight: stream N-tiles, double-buffered by the Pallas pipeline.
            pl.BlockSpec((K, tile_n), lambda j: (0, j)),
            # bias: matching N-tile.
            pl.BlockSpec((1, tile_n), lambda j: (0, j)),
        ],
        out_specs=pl.BlockSpec((B, tile_n), lambda j: (0, j)),
        compiler_params=pltpu.CompilerParams(
            # N tiles are independent -> megacore sharding across v7x's 2 TensorCores.
            dimension_semantics=("parallel",),
        ),
        cost_estimate=cost,
    )(x_bf16, w_t_pad, b_pad)

    return out[:, :num_classes]


def init_raw_params(key, num_classes=NUM_CLASSES, in_features=IN_FEATURES):
    """Deterministic synthetic init matching nn.Linear(1280, num_classes)."""
    kw, kb = jax.random.split(key)
    bound = 1.0 / jnp.sqrt(in_features)
    w = jax.random.uniform(kw, (num_classes, in_features), jnp.float32, -bound, bound)
    b = jax.random.uniform(kb, (num_classes,), jnp.float32, -bound, bound)
    return w, b


if __name__ == "__main__":
    key = jax.random.PRNGKey(0)
    k_x, k_p = jax.random.split(key)

    batch = 2
    x = jax.random.normal(k_x, (batch, IN_FEATURES), jnp.float32)

    # One-time parameter preparation (pad to multiple of TILE_N, cast weight to bf16).
    w_raw, b_raw = init_raw_params(k_p)
    w_t_pad, b_pad, n_classes = prepare_params(w_raw, b_raw)

    out = mobilenet_classifier_head(x, w_t_pad, b_pad, n_classes)
    out = jax.block_until_ready(out)

    # Reference in plain JAX with the same bf16 operand precision / f32 accumulate.
    ref = jnp.dot(
        x.astype(jnp.bfloat16).astype(jnp.float32),
        w_t_pad[:, :n_classes].astype(jnp.float32),
    ) + b_pad[:, :n_classes]

    assert out.shape == (batch, NUM_CLASSES)
    assert out.dtype == jnp.float32
    assert jnp.allclose(out, ref, atol=1e-2, rtol=1e-2)

    print("KERNEL_OK")
</pallas_src>

<mosaic_0001>
module attributes {stable_mosaic.version = 11 : i64} {
  func.func @classifier_kernel(%arg0: i32, %arg1: memref<2x1280xbf16, #tpu.memory_space<vmem>>, %arg2: memref<1280x512xbf16, #tpu.memory_space<vmem>>, %arg3: memref<1x512xf32, #tpu.memory_space<vmem>>, %arg4: memref<2x512xf32, #tpu.memory_space<vmem>>) attributes {dimension_semantics = [#tpu.dimension_semantics<parallel>], iteration_bounds = array<i64: 2>, scalar_prefetch = 0 : i64, scratch_operands = 0 : i64, tpu.core_type = #tpu.core_type<tc>, window_params = [{pipeline_mode = #tpu.pipeline_mode<synchronous>, transform_indices = @transform_0, window_bounds = array<i64: 2, 1280>}, {transform_indices = @transform_1, window_bounds = array<i64: 1280, 512>}, {transform_indices = @transform_2, window_bounds = array<i64: 1, 512>}, {transform_indices = @transform_3, window_bounds = array<i64: 2, 512>}]} {
    %c0 = arith.constant 0 : index
    %c0_0 = arith.constant 0 : index
    %0 = vector.load %arg1[%c0, %c0_0] : memref<2x1280xbf16, #tpu.memory_space<vmem>>, vector<2x1280xbf16>
    %c0_1 = arith.constant 0 : index
    %c0_2 = arith.constant 0 : index
    %1 = vector.load %arg2[%c0_1, %c0_2] : memref<1280x512xbf16, #tpu.memory_space<vmem>>, vector<1280x512xbf16>
    %cst = arith.constant dense<0.000000e+00> : vector<2x512xf32>
    %2 = tpu.matmul %0, %1, %cst {dimension_numbers = #tpu.dot_dimension_numbers<[1], [0], [0], [1], [0, 0, 1, 1], [], []>} : vector<2x1280xbf16>, vector<1280x512xbf16>, vector<2x512xf32> -> vector<2x512xf32>
    %c0_3 = arith.constant 0 : index
    %c0_4 = arith.constant 0 : index
    %3 = vector.load %arg3[%c0_3, %c0_4] : memref<1x512xf32, #tpu.memory_space<vmem>>, vector<1x512xf32>
    %4 = vector.broadcast %3 : vector<1x512xf32> to vector<2x512xf32>
    %5 = arith.addf %2, %4 : vector<2x512xf32>
    %c0_5 = arith.constant 0 : index
    %c0_6 = arith.constant 0 : index
    %6 = vector.load %arg4[%c0_5, %c0_6] : memref<2x512xf32, #tpu.memory_space<vmem>>, vector<2x512xf32>
    tpu.vector_store %arg4[%c0_5, %c0_6], %5 {strides = array<i32>} : memref<2x512xf32, #tpu.memory_space<vmem>>, vector<2x512xf32>,
    return
  }
  func.func @transform_0(%arg0: i32) -> (i32, i32) {
    %c0_i32 = arith.constant 0 : i32
    %c0_i32_0 = arith.constant 0 : i32
    %c0_i32_1 = arith.constant 0 : i32
    return %c0_i32, %c0_i32_0 : i32, i32
  }
  func.func @transform_1(%arg0: i32) -> (i32, i32) {
    %c0_i32 = arith.constant 0 : i32
    %c0_i32_0 = arith.constant 0 : i32
    return %c0_i32, %arg0 : i32, i32
  }
  func.func @transform_2(%arg0: i32) -> (i32, i32) {
    %c0_i32 = arith.constant 0 : i32
    %c0_i32_0 = arith.constant 0 : i32
    return %c0_i32, %arg0 : i32, i32
  }
  func.func @transform_3(%arg0: i32) -> (i32, i32) {
    %c0_i32 = arith.constant 0 : i32
    %c0_i32_0 = arith.constant 0 : i32
    return %c0_i32, %arg0 : i32, i32
  }
}

</mosaic_0001>

<bundles_post_ra>
// kernel: tpu_custom_call.1
= control target key start
LH: loop header
LB: loop body
LE: loop exit
PB: predicated region body
PF: predicated region fallthrough
CT: control target
= control target key end

     0   :  { %s5631_s0 = inlined_call_operand.hbm [shape: bf16[2,1280], index: 0, kind: input, shape index: {}]   ;;  %s5632_s1 = inlined_call_operand.hbm [shape: bf16[1280,1024], index: 1, kind: input, shape index: {}]   ;;  %s5633_s2 = inlined_call_operand.hbm [shape: f32[1,1024], index: 2, kind: input, shape index: {}]   ;;  %s5634_s3 = inlined_call_operand.hbm [shape: f32[2,1024], index: 3, kind: output, shape index: {}]  }
   0x1   :  { %5635 = sst [smem:[#allocation12_spill]] %s5631_s0 }
   0x2   :  { %8 = vsyncpa [#allocation3], 0 }
   0x3   :  { %9 = vsyncpa [#allocation6], 0 }
   0x4   :  { %11 = vsyncpa [#allocation6 + $0x1], 0 }
   0x5   :  { %12 = vsyncpa [#allocation4], 0 }
   0x6   :  { %14 = vsyncpa [#allocation4 + $0x1], 0  ;;  %s4730_s12 = smov 0   ;;  %s4732_s13 = smov 0  }
   0x7   :  { %s4734_s14 = smov 0   ;;  %s4736_s15 = smov 0  }
   0x8 LB: > { %s4751_s16 = sadd.s32 1, %s4704_s15   ;;  %s48_s17 = sadd.s32 1, %s4700_s14  ;;  %s4704_s15 = sphi %s4736_s15, %s5646_s15   ;;  %s4700_s14 = sphi %s4734_s14, %s5645_s14   ;;  %s4696_s13 = sphi %s4732_s13, %s5644_s13   ;;  %s4692_s12 = sphi %s4730_s12, %s5643_s12  }
   0x9   : > { %s45_s18 = ssub.s32 %s4704_s15, %s4751_s16  ;;  %p55_p0 = scmp.ne.s32.totalorder %s4700_s14, %s4696_s13 }
   0xa   : > { %p46_p1 = scmp.eq.s32.totalorder %s45_s18, 0  ;;  %p56_p2 = scmp.eq.s32.totalorder %s4704_s15, 0 }
   0xb   : > { %p4502_p4 = scmp.lt.s32.totalorder %s4704_s15, 2  ;;  %s149_s20 = sand.u32 1, %s4704_s15  }
   0xc   : > { %s4762_s19 = scalar_select %p46_p1, %s4700_s14, %s48_s17  }
   0xd   : > { %p57_p5 = por %p56_p2, %p55_p0  ;;  %s151_s21 = sand.u32 1, %s4700_s14  }
   0xe   : > { %s4474_s22 = smul.u32 2560, %s151_s21  ;;  %s4152_s23 = sshll.u32 %s4704_s15, 4 }
   0xf   : > { %s158_s26 = scalar_lea.hbm %s5632_s1, %s4152_s23  ;;  %p4775_p6 = pnand %p4502_p4, %p57_p5 }
  0x10   : > { %s159_s28 = sshll.u32 %s158_s26, 4  ;;  %s153_s29 = scalar_lea.vmem [#allocation5], %s4474_s22  ;;  %s160_s28 = int_to_ptr.hbm [resolvable:$true] %s159_s28 }
  0x11   : > { %s161_s30 = sshll.u32 %s153_s29, 4  ;;  %s4779_s4 = scalar_lea.sflag [#allocation6], %s149_s20  ;;  %s162_s30 = int_to_ptr.vmem [resolvable:$true] %s161_s30 }
  0x12   : > { %s4544_s5 = sshra.s32 %s160_s28, 4  ;;  %p4548_p8 = pneg %p4775_p6  ;;  %s4545_s5 = int_to_ptr.hbm [resolvable:$true] %s4544_s5 }
  0x13   : > { %s4546_s6 = scalar_lea.hbm %s4545_s5, 2560  ;;  %s4551_s9 = scalar_lea.hbm %s5632_s1, 5120 }
  0x14   : > { %p4547_p7 = scmp.ne.s32.totalorder %s4545_s5, %s4546_s6  ;;  %p4552_p11 = scmp.lt.s32.totalorder %s4545_s5, %s5632_s1 }
  0x15   : > { %p4553_p12 = scmp.lt.s32.totalorder %s4551_s9, %s4546_s6 }
  0x16   : > { %p4549_p9 = pnand %p4548_p8, %p4547_p7 }
  0x17   : > { %p4554_p13 = por %p4553_p12, %p4552_p11 }
  0x18   : > { %p4550_p10 = pneg %p4549_p9 }
  0x1a   : > { %p4555_p1 = pnand %p4554_p13, %p4550_p10 }
  0x1c   : > { %4558 = shalt.err (!%p4555_p1)
}
  0x1d   : > { %s4706_s17 = smov 512   ;;  %s4707_s18 = smov 256  }
  0x1e   : > { %s4708_s20 = smov 16   ;;  %s4796_s22 = sadd.s32 4294967295, %s4704_s15  }
  0x1f   : > { %4493 = dma.hbm_to_vmem [thread:$0]  (!%p4775_p6), %s160_s28, 40960, %s162_s30, %s4779_s4, %s4706_s17, %s4707_s18, %s4708_s20  }
  0x20   : > { %s2855_s23 = sadd.s32 4294967294, %s4704_s15   ;;  %p61_p2 = scmp.ne.s32.totalorder %s4696_s13, %s4692_s12 }
  0x21   : > { %p62_p4 = scmp.eq.s32.totalorder %s4796_s22, 0  ;;  %p111_p5 = scmp.eq.s32.totalorder %s4796_s22, 1 }
  0x22   : > { %p117_p7 = scmp.eq.s32.totalorder %s2855_s23, 1  ;;  %p2856_p9 = scmp.ge.s32.totalorder %s4704_s15, 1 }
  0x23   : > { %p4806_p10 = por %p62_p4, %p61_p2  ;;  %p4813_p11 = por %p111_p5, %p55_p0 }
  0x24   : > { %p4817_p12 = por %p117_p7, %p61_p2  ;;  %p124_p13 = scmp.lt.s32.totalorder %s4704_s15, 3 }
  0x25   : > { %s5640_s0 = sld [smem:[#allocation12_spill]]  ;;  %s2861_s6 = sshll.u32 %s151_s21, 2 }
  0x26   : > { %p4825_p1 = pnand %p2856_p9, %p124_p13  ;;  %s4709_s7 = smov [#allocation2]  }
  0x27   : > { %s138_s8 = sshll.u32 %s4709_s7, 4  ;;  %s2862_s9 = sshll.u32 %s4704_s15, 2  ;;  %s139_s8 = int_to_ptr.vmem [resolvable:$true] %s138_s8 }
  0x28   : > { %p4486_p0 = pneg %p4825_p1  ;;  %s179_s17 = scalar_lea.hbm %s5633_s2, %s2862_s9 }
  0x29   : > { %s175_s18 = scalar_lea.vmem [#allocation7], %s2861_s6  ;;  %s181_s23 = sshll.u32 %s179_s17, 4  ;;  %s182_s23 = int_to_ptr.hbm [resolvable:$true] %s181_s23 }
  0x2a   : > { %p4487_p2 = pnand %p4486_p0, %p62_p4  ;;  %s183_s20 = sshll.u32 %s175_s18, 4  ;;  %s184_s20 = int_to_ptr.vmem [resolvable:$true] %s183_s20 }
  0x2b   : > { %s136_s30 = sshll.u32 %s5640_s0, 4  ;;  %s4604_s21 = sshra.s32 %s182_s23, 4  ;;  %s137_s30 = int_to_ptr.hbm [resolvable:$true] %s136_s30  ;;  %s4605_s21 = int_to_ptr.hbm [resolvable:$true] %s4604_s21 }
  0x2c   : > { %4489 = dma.hbm_to_vmem [thread:$0]  (!%p4487_p2), %s137_s30, 160, %s139_s8, [#allocation3]  }
  0x2d   : > { %s4606_s28 = scalar_lea.hbm %s4605_s21, 4  ;;  %s4611_s0 = scalar_lea.hbm %s5633_s2, 8 }
  0x2e   : > { %p4607_p5 = scmp.ne.s32.totalorder %s4605_s21, %s4606_s28  ;;  %p4612_p13 = scmp.lt.s32.totalorder %s4605_s21, %s5633_s2 }
  0x2f   : > { %p4613_p0 = scmp.lt.s32.totalorder %s4611_s0, %s4606_s28 }
  0x30   : > { %p4609_p7 = pnand %p4607_p5, %p4548_p8 }
  0x31   : > { %p4614_p2 = por %p4613_p0, %p4612_p13 }
  0x32   : > { %p4610_p9 = pneg %p4609_p7 }
  0x34   : > { %p4615_p3 = pnand %p4614_p2, %p4610_p9 }
  0x36   : > { %4618 = shalt.err (!%p4615_p3)
}
  0x37   : > { %4496 = dma.hbm_to_vmem [thread:$0]  (!%p4775_p6), %s182_s23, 64, %s184_s20, %s4779_s4  }
  0x38   : > { %192 = sbr.rel (%p4825_p1) target bundleno = 536 (0x218), region = 32 }
  0x3d   : > { %4679 = dma.done.wait (%p62_p4), [#allocation3], 160  }
  0x3e   : > { %4681 = vsyncadd (%p62_p4), [#allocation3], 4294967136  ;;  %s199_s0 = sand.u32 1, %s4796_s22   ;;  %s4859_s30 = sand.u32 1, %s4696_s13  }
  0x3f   : > { %s4475_s6 = smul.u32 2560, %s4859_s30  ;;  %s200_s27 = scalar_lea.sflag [#allocation6], %s199_s0 }
  0x41   : > { %s4862_s8 = scalar_lea.vmem [#allocation5], %s4475_s6 }
  0x42   : > { %4683 = dma.done.wait (%p4806_p10), %s200_s27, 41024  }
  0x43   : > { %4685 = vsyncadd (%p4806_p10), %s200_s27, 4294926272  ;;  %v2981_v0 = vld [vmem:[%s4862_s8 + $0xe0] sm:$0xf]  ;;  %v4183_v1 = vld [vmem:[%s4862_s8 + $0xec] sm:$0xf0]  ;;  %s2865_s4 = sshll.u32 %s4859_s30, 2 }
  0x44   : > { %v3109_v2 = vld [vmem:[%s4862_s8 + $0x1e0] sm:$0xf]  ;;  %v2982_v3 = vor.u32 %v4183_v1, %v2981_v0  ;;  %v4215_v4 = vld [vmem:[%s4862_s8 + $0x1ec] sm:$0xf0]  ;;  %s5275_s24 = scalar_lea.vmem [#allocation7], %s2865_s4  ;;  %vm2728_vm0 = vcmask 1041408  }
  0x45   : > { %v3237_v5 = vld [vmem:[%s4862_s8 + $0x2e0] sm:$0xf]  ;;  %v4247_v6 = vld [vmem:[%s4862_s8 + $0x2ec] sm:$0xf0]  ;;  %v3110_v7 = vor.u32 %v4215_v4, %v3109_v2  ;;  %s2866_s5 = sshll.u32 %s4859_s30, 3  ;;  %s4473_s11 = sshll.u32 %s4796_s22, 3 }
  0x46   : > { %v3238_v8 = vor.u32 %v4247_v6, %v3237_v5  ;;  %v3365_v9 = vld [vmem:[%s4862_s8 + $0x3e0] sm:$0xf]  ;;  %v4279_v10 = vld [vmem:[%s4862_s8 + $0x3ec] sm:$0xf0]  ;;  %2201 = vmatpush.bf16.msra.mxu0 %v2982_v3  ;;  %s2748_s20 = scalar_lea.hbm %s5634_s3, %s4473_s11  ;;  %vm2730_vm1 = vcmask 1045508   ;;  %s241_s23 = scalar_lea.vmem [#allocation8], %s2866_s5 }
  0x47   : > { %v2965_v11 = vld [vmem:[%s4862_s8 + $0xc0] sm:$0xf]  ;;  %v3366_v12 = vor.u32 %v4279_v10, %v3365_v9  ;;  %v4179_v13 = vld [vmem:[%s4862_s8 + $0xcc] sm:$0xf0]  ;;  %2214 = vmatpush.bf16.msra.mxu1 %v3110_v7  ;;  %s2750_s21 = sshll.u32 %s241_s23, 4  ;;  %s2752_s28 = sshll.u32 %s2748_s20, 4  ;;  %s2751_s21 = int_to_ptr.vmem [resolvable:$true] %s2750_s21  ;;  %s2753_s28 = int_to_ptr.hbm [resolvable:$true] %s2752_s28 }
  0x48   : > { %v3093_v14 = vld [vmem:[%s4862_s8 + $0x1c0] sm:$0xf]  ;;  %v4211_v15 = vld [vmem:[%s4862_s8 + $0x1cc] sm:$0xf0]  ;;  %2227 = vmatpush.bf16.msra.mxu2 %v3238_v8  ;;  %v2966_v16 = vor.u32 %v4179_v13, %v2965_v11  ;;  %vm2732_vm2 = vcmask 1043456   ;;  %s2737_s22 = scalar_lea.sflag [#allocation4], %s4859_s30 }
  0x49   : > { %v3094_v17 = vor.u32 %v4211_v15, %v3093_v14  ;;  %v3221_v18 = vld [vmem:[%s4862_s8 + $0x2c0] sm:$0xf]  ;;  %v4243_v19 = vld [vmem:[%s4862_s8 + $0x2cc] sm:$0xf0]  ;;  %2240 = vmatpush.bf16.msra.mxu3 %v3366_v12  ;;  %s4648_s29 = sshra.s32 %s2753_s28, 4  ;;  %s4654_s0 = scalar_lea.hbm %s5634_s3, 16  ;;  %s4649_s29 = int_to_ptr.hbm [resolvable:$true] %s4648_s29 }
  0x4a   : > { %v3349_v20 = vld [vmem:[%s4862_s8 + $0x3c0] sm:$0xf]  ;;  %v3222_v21 = vor.u32 %v4243_v19, %v3221_v18  ;;  %v4275_v22 = vld [vmem:[%s4862_s8 + $0x3cc] sm:$0xf0]  ;;  %2202 = vmatpush.bf16.msra.mxu0 %v2966_v16  ;;  %s4650_s7 = scalar_lea.hbm %s4649_s29, 8  ;;  %p4655_p4 = scmp.lt.s32.totalorder %s4649_s29, %s5634_s3 }
  0x4b   : > { %v2949_v23 = vld [vmem:[%s4862_s8 + $0xa0] sm:$0xf]  ;;  %v4175_v24 = vld [vmem:[%s4862_s8 + $0xac] sm:$0xf0]  ;;  %v3350_v25 = vor.u32 %v4275_v22, %v3349_v20  ;;  %2215 = vmatpush.bf16.msra.mxu1 %v3094_v17  ;;  %p4651_p3 = scmp.ne.s32.totalorder %s4649_s29, %s4650_s7  ;;  %p4656_p10 = scmp.lt.s32.totalorder %s4654_s0, %s4650_s7 }
  0x4c   : > { %v3077_v26 = vld [vmem:[%s4862_s8 + $0x1a0] sm:$0xf]  ;;  %v4207_v27 = vld [vmem:[%s4862_s8 + $0x1ac] sm:$0xf0]  ;;  %v2950_v29 = vor.u32 %v4175_v24, %v2949_v23  ;;  %2228 = vmatpush.bf16.msra.mxu2 %v3222_v21 }
  0x4d   : > { %v3205_v28 = vld [vmem:[%s4862_s8 + $0x2a0] sm:$0xf]  ;;  %v4239_v30 = vld [vmem:[%s4862_s8 + $0x2ac] sm:$0xf0]  ;;  %v3078_v33 = vor.u32 %v4207_v27, %v3077_v26  ;;  %2241 = vmatpush.bf16.msra.mxu3 %v3350_v25  ;;  %p4652_p6 = pnand %p4651_p3, %p4813_p11  ;;  %p4657_p1 = por %p4656_p10, %p4655_p4 }
  0x4e   : > { %v3333_v31 = vld [vmem:[%s4862_s8 + $0x3a0] sm:$0xf]  ;;  %v4271_v32 = vld [vmem:[%s4862_s8 + $0x3ac] sm:$0xf0]  ;;  %v3206_v34 = vor.u32 %v4239_v30, %v3205_v28  ;;  %2203 = vmatpush.bf16.msra.mxu0 %v2950_v29 }
  0x4f   : > { %v2933_v35 = vld [vmem:[%s4862_s8 + $0x80] sm:$0xf]  ;;  %v4171_v36 = vld [vmem:[%s4862_s8 + $0x8c] sm:$0xf0]  ;;  %v3334_v38 = vor.u32 %v4271_v32, %v3333_v31  ;;  %2216 = vmatpush.bf16.msra.mxu1 %v3078_v33  ;;  %p4653_p8 = pneg %p4652_p6 }
  0x50   : > { %v3061_v37 = vld [vmem:[%s4862_s8 + $0x180] sm:$0xf]  ;;  %v4203_v39 = vld [vmem:[%s4862_s8 + $0x18c] sm:$0xf0]  ;;  %v2934_v44 = vor.u32 %v4171_v36, %v2933_v35  ;;  %2229 = vmatpush.bf16.msra.mxu2 %v3206_v34 }
  0x51   : > { %v3189_v40 = vld [vmem:[%s4862_s8 + $0x280] sm:$0xf]  ;;  %v4235_v41 = vld [vmem:[%s4862_s8 + $0x28c] sm:$0xf0]  ;;  %v3062_v45 = vor.u32 %v4203_v39, %v3061_v37  ;;  %2242 = vmatpush.bf16.msra.mxu3 %v3334_v38  ;;  %p4658_p5 = pnand %p4657_p1, %p4653_p8 }
  0x52   : > { %v3317_v42 = vld [vmem:[%s4862_s8 + $0x380] sm:$0xf]  ;;  %v4267_v43 = vld [vmem:[%s4862_s8 + $0x38c] sm:$0xf0]  ;;  %v3190_v46 = vor.u32 %v4235_v41, %v3189_v40  ;;  %2204 = vmatpush.bf16.msra.mxu0 %v2934_v44 }
  0x53   : > { %v2917_v47 = vld [vmem:[%s4862_s8 + $0x60] sm:$0xf]  ;;  %v4167_v48 = vld [vmem:[%s4862_s8 + $0x6c] sm:$0xf0]  ;;  %v3318_v50 = vor.u32 %v4267_v43, %v3317_v42  ;;  %2217 = vmatpush.bf16.msra.mxu1 %v3062_v45 }
  0x54   : > { %v3045_v49 = vld [vmem:[%s4862_s8 + $0x160] sm:$0xf]  ;;  %v4199_v51 = vld [vmem:[%s4862_s8 + $0x16c] sm:$0xf0]  ;;  %v2918_v56 = vor.u32 %v4167_v48, %v2917_v47  ;;  %2230 = vmatpush.bf16.msra.mxu2 %v3190_v46 }
  0x55   : > { %v3173_v52 = vld [vmem:[%s4862_s8 + $0x260] sm:$0xf]  ;;  %v4231_v53 = vld [vmem:[%s4862_s8 + $0x26c] sm:$0xf0]  ;;  %v3046_v57 = vor.u32 %v4199_v51, %v3045_v49  ;;  %2243 = vmatpush.bf16.msra.mxu3 %v3318_v50 }
  0x56   : > { %v3301_v54 = vld [vmem:[%s4862_s8 + $0x360] sm:$0xf]  ;;  %v4263_v55 = vld [vmem:[%s4862_s8 + $0x36c] sm:$0xf0]  ;;  %v3174_v58 = vor.u32 %v4231_v53, %v3173_v52  ;;  %2205 = vmatpush.bf16.msra.mxu0 %v2918_v56 }
  0x57   : > { %v2901_v59 = vld [vmem:[%s4862_s8 + $0x40] sm:$0xf]  ;;  %v4163_v60 = vld [vmem:[%s4862_s8 + $0x4c] sm:$0xf0]  ;;  %v3302_v62 = vor.u32 %v4263_v55, %v3301_v54  ;;  %2218 = vmatpush.bf16.msra.mxu1 %v3046_v57 }
  0x58   : > { %v3029_v61 = vld [vmem:[%s4862_s8 + $0x140] sm:$0xf]  ;;  %v4195_v63 = vld [vmem:[%s4862_s8 + $0x14c] sm:$0xf0]  ;;  %v2902_v4 = vor.u32 %v4163_v60, %v2901_v59  ;;  %2231 = vmatpush.bf16.msra.mxu2 %v3174_v58 }
  0x59   : > { %v3157_v0 = vld [vmem:[%s4862_s8 + $0x240] sm:$0xf]  ;;  %v4227_v1 = vld [vmem:[%s4862_s8 + $0x24c] sm:$0xf0]  ;;  %v3030_v5 = vor.u32 %v4195_v63, %v3029_v61  ;;  %2244 = vmatpush.bf16.msra.mxu3 %v3302_v62 }
  0x5a   : > { %v3285_v2 = vld [vmem:[%s4862_s8 + $0x340] sm:$0xf]  ;;  %v4259_v3 = vld [vmem:[%s4862_s8 + $0x34c] sm:$0xf0]  ;;  %v3158_v6 = vor.u32 %v4227_v1, %v3157_v0  ;;  %2206 = vmatpush.bf16.msra.mxu0 %v2902_v4 }
  0x5b   : > { %v2885_v7 = vld [vmem:[%s4862_s8 + $0x20] sm:$0xf]  ;;  %v4159_v8 = vld [vmem:[%s4862_s8 + $0x2c] sm:$0xf0]  ;;  %v3286_v10 = vor.u32 %v4259_v3, %v3285_v2  ;;  %2219 = vmatpush.bf16.msra.mxu1 %v3030_v5  ;;  %v245_v2 = vld [vmem:[#allocation2] sm:$0xff] }
  0x5c   : > { %v3013_v9 = vld [vmem:[%s4862_s8 + $0x120] sm:$0xf]  ;;  %v4191_v11 = vld [vmem:[%s4862_s8 + $0x12c] sm:$0xf0]  ;;  %v2886_v16 = vor.u32 %v4159_v8, %v2885_v7  ;;  %2232 = vmatpush.bf16.msra.mxu2 %v3158_v6  ;;  %578 = vst [vmem:[#allocation1] ss:$9 sm:$0xff] %v245_v2 }
  0x5d   : > { %v3141_v12 = vld [vmem:[%s4862_s8 + $0x220] sm:$0xf]  ;;  %v4223_v13 = vld [vmem:[%s4862_s8 + $0x22c] sm:$0xf0]  ;;  %v3014_v19 = vor.u32 %v4191_v11, %v3013_v9  ;;  %2245 = vmatpush.bf16.msra.mxu3 %v3286_v10 }
  0x5e   : > { %v3269_v14 = vld [vmem:[%s4862_s8 + $0x320] sm:$0xf]  ;;  %v4255_v15 = vld [vmem:[%s4862_s8 + $0x32c] sm:$0xf0]  ;;  %v3142_v20 = vor.u32 %v4223_v13, %v3141_v12  ;;  %2207 = vmatpush.bf16.msra.mxu0 %v2886_v16 }
  0x5f   : > { %v2869_v17 = vld [vmem:[%s4862_s8] sm:$0xf]  ;;  %v4155_v18 = vld [vmem:[%s4862_s8 + $0xc] sm:$0xf0]  ;;  %v3270_v24 = vor.u32 %v4255_v15, %v3269_v14  ;;  %2220 = vmatpush.bf16.msra.mxu1 %v3014_v19 }
  0x60   : > { %v2997_v21 = vld [vmem:[%s4862_s8 + $0x100] sm:$0xf]  ;;  %v4187_v22 = vld [vmem:[%s4862_s8 + $0x10c] sm:$0xf0]  ;;  %v2870_v31 = vor.u32 %v4155_v18, %v2869_v17  ;;  %2233 = vmatpush.bf16.msra.mxu2 %v3142_v20 }
  0x61   : > { %v3125_v23 = vld [vmem:[%s4862_s8 + $0x200] sm:$0xf]  ;;  %v4219_v25 = vld [vmem:[%s4862_s8 + $0x20c] sm:$0xf0]  ;;  %v2998_v35 = vor.u32 %v4187_v22, %v2997_v21  ;;  %2246 = vmatpush.bf16.msra.mxu3 %v3270_v24 }
  0x62   : > { %v3253_v26 = vld [vmem:[%s4862_s8 + $0x300] sm:$0xf]  ;;  %v4251_v27 = vld [vmem:[%s4862_s8 + $0x30c] sm:$0xf0]  ;;  %v3126_v36 = vor.u32 %v4219_v25, %v3125_v23  ;;  %2208 = vmatpush.bf16.msra.mxu0 %v2870_v31 }
  0x63   : > { %v3493_v28 = vld [vmem:[%s4862_s8 + $0x4e0] sm:$0xf]  ;;  %v4311_v29 = vld [vmem:[%s4862_s8 + $0x4ec] sm:$0xf0]  ;;  %v3254_v39 = vor.u32 %v4251_v27, %v3253_v26  ;;  %2221 = vmatpush.bf16.msra.mxu1 %v2998_v35 }
  0x64   : > { %v3621_v30 = vld [vmem:[%s4862_s8 + $0x5e0] sm:$0xf]  ;;  %v4343_v32 = vld [vmem:[%s4862_s8 + $0x5ec] sm:$0xf0]  ;;  %v3494_v40 = vor.u32 %v4311_v29, %v3493_v28  ;;  %2234 = vmatpush.bf16.msra.mxu2 %v3126_v36 }
  0x65   : > { %v3749_v33 = vld [vmem:[%s4862_s8 + $0x6e0] sm:$0xf]  ;;  %v4375_v34 = vld [vmem:[%s4862_s8 + $0x6ec] sm:$0xf0]  ;;  %v3622_v41 = vor.u32 %v4343_v32, %v3621_v30  ;;  %2247 = vmatpush.bf16.msra.mxu3 %v3254_v39 }
  0x66   : > { %v3877_v37 = vld [vmem:[%s4862_s8 + $0x7e0] sm:$0xf]  ;;  %v4407_v38 = vld [vmem:[%s4862_s8 + $0x7ec] sm:$0xf0]  ;;  %v3750_v42 = vor.u32 %v4375_v34, %v3749_v33  ;;  %2253 = vmatpush.bf16.msrb.mxu0 %v3494_v40  ;;  %v4981_v34 = vld [vmem:[#allocation1 + $0x9] sm:$0xff] }
  0x67   : > { %v3477_v43 = vld [vmem:[%s4862_s8 + $0x4c0] sm:$0xf]  ;;  %v4307_v44 = vld [vmem:[%s4862_s8 + $0x4cc] sm:$0xf0]  ;;  %v3878_v46 = vor.u32 %v4407_v38, %v3877_v37  ;;  %2266 = vmatpush.bf16.msrb.mxu1 %v3622_v41 }
  0x68   : > { %v3605_v45 = vld [vmem:[%s4862_s8 + $0x5c0] sm:$0xf]  ;;  %v4339_v47 = vld [vmem:[%s4862_s8 + $0x5cc] sm:$0xf0]  ;;  %v3478_v52 = vor.u32 %v4307_v44, %v3477_v43  ;;  %2279 = vmatpush.bf16.msrb.mxu2 %v3750_v42  ;;  %2222 = vmatmul.bf16.vlgmr.msra.gmra.mxu1 %v4981_v34 }
  0x69   : > { %v3733_v48 = vld [vmem:[%s4862_s8 + $0x6c0] sm:$0xf]  ;;  %v4371_v49 = vld [vmem:[%s4862_s8 + $0x6cc] sm:$0xf0]  ;;  %v3606_v53 = vor.u32 %v4339_v47, %v3605_v45  ;;  %2292 = vmatpush.bf16.msrb.mxu3 %v3878_v46 }
  0x6a   : > { %v3861_v50 = vld [vmem:[%s4862_s8 + $0x7c0] sm:$0xf]  ;;  %v4403_v51 = vld [vmem:[%s4862_s8 + $0x7cc] sm:$0xf0]  ;;  %v3734_v54 = vor.u32 %v4371_v49, %v3733_v48  ;;  %2254 = vmatpush.bf16.msrb.mxu0 %v3478_v52 }
  0x6b   : > { %v3461_v55 = vld [vmem:[%s4862_s8 + $0x4a0] sm:$0xf]  ;;  %v4303_v56 = vld [vmem:[%s4862_s8 + $0x4ac] sm:$0xf0]  ;;  %v3862_v58 = vor.u32 %v4403_v51, %v3861_v50  ;;  %2267 = vmatpush.bf16.msrb.mxu1 %v3606_v53 }
  0x6c   : > { %v3589_v57 = vld [vmem:[%s4862_s8 + $0x5a0] sm:$0xf]  ;;  %v4335_v59 = vld [vmem:[%s4862_s8 + $0x5ac] sm:$0xf0]  ;;  %v3462_v0 = vor.u32 %v4303_v56, %v3461_v55  ;;  %2280 = vmatpush.bf16.msrb.mxu2 %v3734_v54 }
  0x6d   : > { %v3717_v60 = vld [vmem:[%s4862_s8 + $0x6a0] sm:$0xf]  ;;  %v4367_v61 = vld [vmem:[%s4862_s8 + $0x6ac] sm:$0xf0]  ;;  %v3590_v3 = vor.u32 %v4335_v59, %v3589_v57  ;;  %2293 = vmatpush.bf16.msrb.mxu3 %v3862_v58 }
  0x6e   : > { %v3845_v62 = vld [vmem:[%s4862_s8 + $0x7a0] sm:$0xf]  ;;  %v4399_v63 = vld [vmem:[%s4862_s8 + $0x7ac] sm:$0xf0]  ;;  %v3718_v4 = vor.u32 %v4367_v61, %v3717_v60  ;;  %2255 = vmatpush.bf16.msrb.mxu0 %v3462_v0 }
  0x6f   : > { %v3445_v1 = vld [vmem:[%s4862_s8 + $0x480] sm:$0xf]  ;;  %v4299_v5 = vld [vmem:[%s4862_s8 + $0x48c] sm:$0xf0]  ;;  %v3846_v7 = vor.u32 %v4399_v63, %v3845_v62  ;;  %2268 = vmatpush.bf16.msrb.mxu1 %v3590_v3 }
  0x70   : > { %v3573_v6 = vld [vmem:[%s4862_s8 + $0x580] sm:$0xf]  ;;  %v4331_v8 = vld [vmem:[%s4862_s8 + $0x58c] sm:$0xf0]  ;;  %v3446_v13 = vor.u32 %v4299_v5, %v3445_v1  ;;  %2281 = vmatpush.bf16.msrb.mxu2 %v3718_v4 }
  0x71   : > { %v3701_v9 = vld [vmem:[%s4862_s8 + $0x680] sm:$0xf]  ;;  %v4363_v10 = vld [vmem:[%s4862_s8 + $0x68c] sm:$0xf0]  ;;  %v3574_v14 = vor.u32 %v4331_v8, %v3573_v6  ;;  %2294 = vmatpush.bf16.msrb.mxu3 %v3846_v7  ;;  %v4181_v6 = vld [vmem:[%s4862_s8 + $0xe4] sm:$0xf] }
  0x72   : > { %v3829_v11 = vld [vmem:[%s4862_s8 + $0x780] sm:$0xf]  ;;  %v4395_v12 = vld [vmem:[%s4862_s8 + $0x78c] sm:$0xf0]  ;;  %v3702_v15 = vor.u32 %v4363_v10, %v3701_v9  ;;  %2256 = vmatpush.bf16.msrb.mxu0 %v3446_v13  ;;  %v2983_v7 = vld [vmem:[%s4862_s8 + $0xf0] sm:$0xf0] }
  0x73   : > { %v3429_v16 = vld [vmem:[%s4862_s8 + $0x460] sm:$0xf]  ;;  %v4295_v17 = vld [vmem:[%s4862_s8 + $0x46c] sm:$0xf0]  ;;  %v3830_v19 = vor.u32 %v4395_v12, %v3829_v11  ;;  %2269 = vmatpush.bf16.msrb.mxu1 %v3574_v14  ;;  %v4213_v10 = vld [vmem:[%s4862_s8 + $0x1e4] sm:$0xf] }
  0x74   : > { %v3557_v18 = vld [vmem:[%s4862_s8 + $0x560] sm:$0xf]  ;;  %v4327_v20 = vld [vmem:[%s4862_s8 + $0x56c] sm:$0xf0]  ;;  %v3430_v26 = vor.u32 %v4295_v17, %v3429_v16  ;;  %2282 = vmatpush.bf16.msrb.mxu2 %v3702_v15  ;;  %v3111_v11 = vld [vmem:[%s4862_s8 + $0x1f0] sm:$0xf0]  ;;  %v2986_v15 = vor.u32 %v4181_v6, %v2983_v7 }
  0x75   : > { %v3685_v21 = vld [vmem:[%s4862_s8 + $0x660] sm:$0xf]  ;;  %v4359_v22 = vld [vmem:[%s4862_s8 + $0x66c] sm:$0xf0]  ;;  %v3558_v30 = vor.u32 %v4327_v20, %v3557_v18  ;;  %2295 = vmatpush.bf16.msrb.mxu3 %v3830_v19  ;;  %v3114_v19 = vor.u32 %v4213_v10, %v3111_v11 }
  0x76   : > { %v3813_v23 = vld [vmem:[%s4862_s8 + $0x760] sm:$0xf]  ;;  %v4391_v24 = vld [vmem:[%s4862_s8 + $0x76c] sm:$0xf0]  ;;  %v3686_v31 = vor.u32 %v4359_v22, %v3685_v21  ;;  %2257 = vmatpush.bf16.msrb.mxu0 %v3430_v26  ;;  %v4177_v21 = vld [vmem:[%s4862_s8 + $0xc4] sm:$0xf] }
  0x77   : > { %v3413_v25 = vld [vmem:[%s4862_s8 + $0x440] sm:$0xf]  ;;  %v4975_v28 = vld [vmem:[#allocation1] sm:$0xff]  ;;  %v3814_v35 = vor.u32 %v4391_v24, %v3813_v23  ;;  %2270 = vmatpush.bf16.msrb.mxu1 %v3558_v30  ;;  %v4209_v23 = vld [vmem:[%s4862_s8 + $0x1c4] sm:$0xf] }
  0x78   : > { %v4973_v27 = vld [vmem:[#allocation1 + $0x12] sm:$0xff]  ;;  %v4977_v29 = vld [vmem:[#allocation1 + $0x1b] sm:$0xff]  ;;  %2209 = vmatmul.bf16.vlgmr.msra.gmra.mxu0 %v4975_v28  ;;  %2283 = vmatpush.bf16.msrb.mxu2 %v3686_v31  ;;  %v2967_v22 = vld [vmem:[%s4862_s8 + $0xd0] sm:$0xf0] }
  0x79   : > { %v4291_v32 = vld [vmem:[%s4862_s8 + $0x44c] sm:$0xf0]  ;;  %v3541_v33 = vld [vmem:[%s4862_s8 + $0x540] sm:$0xf]  ;;  %2235 = vmatmul.bf16.vlgmr.msra.gmra.mxu2 %v4973_v27  ;;  %2248 = vmatmul.bf16.vlgmr.msra.gmra.mxu3 %v4977_v29  ;;  %v3095_v24 = vld [vmem:[%s4862_s8 + $0x1d0] sm:$0xf0] }
  0x7a   : > { %v4323_v36 = vld [vmem:[%s4862_s8 + $0x54c] sm:$0xf0]  ;;  %v3669_v37 = vld [vmem:[%s4862_s8 + $0x640] sm:$0xf]  ;;  %v3414_v41 = vor.u32 %v4291_v32, %v3413_v25  ;;  %2296 = vmatpush.bf16.msrb.mxu3 %v3814_v35  ;;  %v5024_v25 = vld [vmem:[#allocation1 + $0x36] sm:$0xff]  ;;  %v2970_v35 = vor.u32 %v4177_v21, %v2967_v22 }
  0x7b   : > { %v4355_v38 = vld [vmem:[%s4862_s8 + $0x64c] sm:$0xf0]  ;;  %v3797_v39 = vld [vmem:[%s4862_s8 + $0x740] sm:$0xf]  ;;  %v3542_v42 = vor.u32 %v4323_v36, %v3541_v33 }
  0x7c   : > { %v4387_v40 = vld [vmem:[%s4862_s8 + $0x74c] sm:$0xf0]  ;;  %v3670_v43 = vor.u32 %v4355_v38, %v3669_v37  ;;  %v3397_v44 = vld [vmem:[%s4862_s8 + $0x420] sm:$0xf]  ;;  %2258 = vmatpush.bf16.msrb.mxu0 %v3414_v41  ;;  %v4173_v41 = vld [vmem:[%s4862_s8 + $0xa4] sm:$0xf] }
  0x7d   : > { %v4287_v45 = vld [vmem:[%s4862_s8 + $0x42c] sm:$0xf0]  ;;  %v3525_v46 = vld [vmem:[%s4862_s8 + $0x520] sm:$0xf]  ;;  %v3798_v47 = vor.u32 %v4387_v40, %v3797_v39  ;;  %2271 = vmatpush.bf16.msrb.mxu1 %v3542_v42  ;;  %v3098_v39 = vor.u32 %v4209_v23, %v3095_v24  ;;  %v2951_v42 = vld [vmem:[%s4862_s8 + $0xb0] sm:$0xf0] }
  0x7e   : > { %v4319_v48 = vld [vmem:[%s4862_s8 + $0x52c] sm:$0xf0]  ;;  %v3653_v49 = vld [vmem:[%s4862_s8 + $0x620] sm:$0xf]  ;;  %v3398_v53 = vor.u32 %v4287_v45, %v3397_v44  ;;  %2284 = vmatpush.bf16.msrb.mxu2 %v3670_v43  ;;  %v4205_v43 = vld [vmem:[%s4862_s8 + $0x1a4] sm:$0xf] }
  0x7f   : > { %v4351_v50 = vld [vmem:[%s4862_s8 + $0x62c] sm:$0xf0]  ;;  %v3781_v51 = vld [vmem:[%s4862_s8 + $0x720] sm:$0xf]  ;;  %v3526_v56 = vor.u32 %v4319_v48, %v3525_v46  ;;  %2297 = vmatpush.bf16.msrb.mxu3 %v3798_v47  ;;  %v3079_v44 = vld [vmem:[%s4862_s8 + $0x1b0] sm:$0xf0]  ;;  %v2954_v47 = vor.u32 %v4173_v41, %v2951_v42 }
  0x80   : > { %v4383_v52 = vld [vmem:[%s4862_s8 + $0x72c] sm:$0xf0]  ;;  %v3381_v54 = vld [vmem:[%s4862_s8 + $0x400] sm:$0xf]  ;;  %v3654_v57 = vor.u32 %v4351_v50, %v3653_v49  ;;  %2259 = vmatpush.bf16.msrb.mxu0 %v3398_v53  ;;  %v4169_v53 = vld [vmem:[%s4862_s8 + $0x84] sm:$0xf] }
  0x81   : > { %v4283_v55 = vld [vmem:[%s4862_s8 + $0x40c] sm:$0xf0]  ;;  %v3509_v58 = vld [vmem:[%s4862_s8 + $0x500] sm:$0xf]  ;;  %v3782_v61 = vor.u32 %v4383_v52, %v3781_v51  ;;  %2272 = vmatpush.bf16.msrb.mxu1 %v3526_v56  ;;  %v3082_v51 = vor.u32 %v4205_v43, %v3079_v44  ;;  %v3063_v56 = vld [vmem:[%s4862_s8 + $0x190] sm:$0xf0] }
  0x82   : > { %v4315_v59 = vld [vmem:[%s4862_s8 + $0x50c] sm:$0xf0]  ;;  %v3637_v60 = vld [vmem:[%s4862_s8 + $0x600] sm:$0xf]  ;;  %v3382_v4 = vor.u32 %v4283_v55, %v3381_v54  ;;  %2285 = vmatpush.bf16.msrb.mxu2 %v3654_v57  ;;  %v2935_v54 = vld [vmem:[%s4862_s8 + $0x90] sm:$0xf0] }
  0x83   : > { %v4347_v62 = vld [vmem:[%s4862_s8 + $0x60c] sm:$0xf0]  ;;  %v3765_v63 = vld [vmem:[%s4862_s8 + $0x700] sm:$0xf]  ;;  %v3510_v8 = vor.u32 %v4315_v59, %v3509_v58  ;;  %2298 = vmatpush.bf16.msrb.mxu3 %v3782_v61  ;;  %v4201_v55 = vld [vmem:[%s4862_s8 + $0x184] sm:$0xf] }
  0x84   : > { %v4379_v0 = vld [vmem:[%s4862_s8 + $0x70c] sm:$0xf0]  ;;  %v4005_v1 = vld [vmem:[%s4862_s8 + $0x8e0] sm:$0xf]  ;;  %v3638_v9 = vor.u32 %v4347_v62, %v3637_v60  ;;  %2260 = vmatpush.bf16.msrb.mxu0 %v3382_v4  ;;  %v246_v57 = vld [vmem:[#allocation2 + $0x8] sm:$0x3]  ;;  %v2938_v60 = vor.u32 %v4169_v53, %v2935_v54 }
  0x85   : > { %v4439_v2 = vld [vmem:[%s4862_s8 + $0x8ec] sm:$0xf0]  ;;  %v4133_v3 = vld [vmem:[%s4862_s8 + $0x9e0] sm:$0xf]  ;;  %v3766_v12 = vor.u32 %v4379_v0, %v3765_v63  ;;  %2273 = vmatpush.bf16.msrb.mxu1 %v3510_v8  ;;  %v3066_v0 = vor.u32 %v4201_v55, %v3063_v56  ;;  %v4197_v4 = vld [vmem:[%s4862_s8 + $0x164] sm:$0xf] }
  0x86   : > { %v4471_v5 = vld [vmem:[%s4862_s8 + $0x9ec] sm:$0xf0]  ;;  %v4006_v13 = vor.u32 %v4439_v2, %v4005_v1  ;;  %v3989_v16 = vld [vmem:[%s4862_s8 + $0x8c0] sm:$0xf]  ;;  %2286 = vmatpush.bf16.msrb.mxu2 %v3638_v9  ;;  %v4165_v2 = vld [vmem:[%s4862_s8 + $0x64] sm:$0xf] }
  0x87   : > { %v4134_v14 = vor.u32 %v4471_v5, %v4133_v3  ;;  %v4435_v17 = vld [vmem:[%s4862_s8 + $0x8cc] sm:$0xf0]  ;;  %v4117_v18 = vld [vmem:[%s4862_s8 + $0x9c0] sm:$0xf]  ;;  %2299 = vmatpush.bf16.msrb.mxu3 %v3766_v12  ;;  %v2919_v3 = vld [vmem:[%s4862_s8 + $0x70] sm:$0xf0] }
  0x88   : > { %v4467_v20 = vld [vmem:[%s4862_s8 + $0x9cc] sm:$0xf0]  ;;  %2305 = vmatpush.bf16.msra.mxu0 %v4006_v13  ;;  %v3990_v26 = vor.u32 %v4435_v17, %v3989_v16  ;;  %v3973_v30 = vld [vmem:[%s4862_s8 + $0x8a0] sm:$0xf]  ;;  %v3047_v5 = vld [vmem:[%s4862_s8 + $0x170] sm:$0xf0]  ;;  %v2922_v8 = vor.u32 %v4165_v2, %v2919_v3 }
  0x89   : > { %v5027_v31 = vld [vmem:[#allocation1 + $0x24] sm:$0xff]  ;;  %2318 = vmatpush.bf16.msra.mxu1 %v4134_v14  ;;  %v4118_v33 = vor.u32 %v4467_v20, %v4117_v18  ;;  %v4101_v37 = vld [vmem:[%s4862_s8 + $0x9a0] sm:$0xf]  ;;  %2287 = vmatmul.bf16.vlgmr.msrb.gmra.mxu2 %v5024_v25  ;;  %v3050_v12 = vor.u32 %v4197_v4, %v3047_v5  ;;  %v4161_v14 = vld [vmem:[%s4862_s8 + $0x44] sm:$0xf] }
  0x8a   : > { %v5029_v32 = vld [vmem:[#allocation1 + $0x3f] sm:$0xff]  ;;  %2331 = vmatpush.bf16.msra.mxu2 %v2986_v15  ;;  %v5033_v38 = vld [vmem:[#allocation1 + $0x2d] sm:$0xff]  ;;  %2261 = vmatmul.bf16.vlgmr.msrb.gmra.mxu0 %v5027_v31  ;;  %v4193_v16 = vld [vmem:[%s4862_s8 + $0x144] sm:$0xf] }
  0x8b   : > { %v4431_v36 = vld [vmem:[%s4862_s8 + $0x8ac] sm:$0xf0]  ;;  %2344 = vmatpush.bf16.msra.mxu3 %v3114_v19  ;;  %2274 = vmatmul.bf16.vlgmr.msrb.gmra.mxu1 %v5033_v38  ;;  %v3957_v48 = vld [vmem:[%s4862_s8 + $0x880] sm:$0xf]  ;;  %588 = vst [vmem:[#allocation1] ss:$9 sm:$0xff] %v246_v57 }
  0x8c   : > { %v4463_v40 = vld [vmem:[%s4862_s8 + $0x9ac] sm:$0xf0]  ;;  %2300 = vmatmul.bf16.vlgmr.msrb.gmra.mxu3 %v5029_v32  ;;  %2306 = vmatpush.bf16.msra.mxu0 %v3990_v26  ;;  %v3974_v45 = vor.u32 %v4431_v36, %v3973_v30  ;;  %v4085_v50 = vld [vmem:[%s4862_s8 + $0x980] sm:$0xf]  ;;  %v2903_v15 = vld [vmem:[%s4862_s8 + $0x50] sm:$0xf0] }
  0x8d   : > { %2319 = vmatpush.bf16.msra.mxu1 %v4118_v33  ;;  %v4102_v46 = vor.u32 %v4463_v40, %v4101_v37  ;;  %v4427_v49 = vld [vmem:[%s4862_s8 + $0x88c] sm:$0xf0]  ;;  %v3941_v61 = vld [vmem:[%s4862_s8 + $0x860] sm:$0xf]  ;;  %v3031_v17 = vld [vmem:[%s4862_s8 + $0x150] sm:$0xf0]  ;;  %v2906_v20 = vor.u32 %v4161_v14, %v2903_v15 }
  0x8e   : > { %2332 = vmatpush.bf16.msra.mxu2 %v2970_v35  ;;  %v4459_v52 = vld [vmem:[%s4862_s8 + $0x98c] sm:$0xf0]  ;;  %v3958_v58 = vor.u32 %v4427_v49, %v3957_v48  ;;  %v4069_v63 = vld [vmem:[%s4862_s8 + $0x960] sm:$0xf]  ;;  %v3034_v24 = vor.u32 %v4193_v16, %v3031_v17  ;;  %v4157_v30 = vld [vmem:[%s4862_s8 + $0x24] sm:$0xf] }
  0x8f   : > { %2345 = vmatpush.bf16.msra.mxu3 %v3098_v39  ;;  %v4086_v59 = vor.u32 %v4459_v52, %v4085_v50  ;;  %v4423_v62 = vld [vmem:[%s4862_s8 + $0x86c] sm:$0xf0]  ;;  %v3925_v9 = vld [vmem:[%s4862_s8 + $0x840] sm:$0xf]  ;;  %v2887_v33 = vld [vmem:[%s4862_s8 + $0x30] sm:$0xf0] }
  0x90   : > { %2307 = vmatpush.bf16.msra.mxu0 %v3974_v45  ;;  %v4455_v1 = vld [vmem:[%s4862_s8 + $0x96c] sm:$0xf0]  ;;  %v3942_v6 = vor.u32 %v4423_v62, %v3941_v61  ;;  %v4053_v11 = vld [vmem:[%s4862_s8 + $0x940] sm:$0xf]  ;;  %v4189_v35 = vld [vmem:[%s4862_s8 + $0x124] sm:$0xf]  ;;  %v2890_v42 = vor.u32 %v4157_v30, %v2887_v33 }
  0x91   : > { %2320 = vmatpush.bf16.msra.mxu1 %v4102_v46  ;;  %v4070_v7 = vor.u32 %v4455_v1, %v4069_v63  ;;  %v4419_v10 = vld [vmem:[%s4862_s8 + $0x84c] sm:$0xf0]  ;;  %v3909_v21 = vld [vmem:[%s4862_s8 + $0x820] sm:$0xf]  ;;  %v3015_v36 = vld [vmem:[%s4862_s8 + $0x130] sm:$0xf0] }
  0x92   : > { %2333 = vmatpush.bf16.msra.mxu2 %v2954_v47  ;;  %v4451_v13 = vld [vmem:[%s4862_s8 + $0x94c] sm:$0xf0]  ;;  %v3926_v18 = vor.u32 %v4419_v10, %v3925_v9  ;;  %v4037_v23 = vld [vmem:[%s4862_s8 + $0x920] sm:$0xf]  ;;  %v4153_v45 = vld [vmem:[%s4862_s8 + $0x4] sm:$0xf]  ;;  %v3018_v46 = vor.u32 %v4189_v35, %v3015_v36 }
  0x93   : > { %2346 = vmatpush.bf16.msra.mxu3 %v3082_v51  ;;  %v4054_v19 = vor.u32 %v4451_v13, %v4053_v11  ;;  %v4415_v22 = vld [vmem:[%s4862_s8 + $0x82c] sm:$0xf0]  ;;  %v3893_v39 = vld [vmem:[%s4862_s8 + $0x800] sm:$0xf]  ;;  %v2871_v47 = vld [vmem:[%s4862_s8 + $0x10] sm:$0xf0] }
  0x94   : > { %2308 = vmatpush.bf16.msra.mxu0 %v3958_v58  ;;  %v4447_v26 = vld [vmem:[%s4862_s8 + $0x92c] sm:$0xf0]  ;;  %v3910_v37 = vor.u32 %v4415_v22, %v3909_v21  ;;  %v4021_v43 = vld [vmem:[%s4862_s8 + $0x900] sm:$0xf]  ;;  %v4185_v48 = vld [vmem:[%s4862_s8 + $0x104] sm:$0xf]  ;;  %v2874_v58 = vor.u32 %v4153_v45, %v2871_v47 }
  0x95   : > { %2321 = vmatpush.bf16.msra.mxu1 %v4086_v59  ;;  %v4411_v40 = vld [vmem:[%s4862_s8 + $0x80c] sm:$0xf0]  ;;  %v4038_v41 = vor.u32 %v4447_v26, %v4037_v23  ;;  %v2999_v49 = vld [vmem:[%s4862_s8 + $0x110] sm:$0xf0]  ;;  %v4245_v50 = vld [vmem:[%s4862_s8 + $0x2e4] sm:$0xf] }
  0x96   : > { %2334 = vmatpush.bf16.msra.mxu2 %v2938_v60  ;;  %v4443_v44 = vld [vmem:[%s4862_s8 + $0x90c] sm:$0xf0]  ;;  %v3239_v51 = vld [vmem:[%s4862_s8 + $0x2f0] sm:$0xf0]  ;;  %v4277_v52 = vld [vmem:[%s4862_s8 + $0x3e4] sm:$0xf]  ;;  %v3894_v53 = vor.u32 %v4411_v40, %v3893_v39  ;;  %v3002_v61 = vor.u32 %v4185_v48, %v2999_v49 }
  0x97   : > { %2347 = vmatpush.bf16.msra.mxu3 %v3066_v0  ;;  %v3367_v54 = vld [vmem:[%s4862_s8 + $0x3f0] sm:$0xf0]  ;;  %v4309_v55 = vld [vmem:[%s4862_s8 + $0x4e4] sm:$0xf]  ;;  %v4022_v57 = vor.u32 %v4443_v44, %v4021_v43  ;;  %v3242_v62 = vor.u32 %v4245_v50, %v3239_v51 }
  0x98   : > { %2309 = vmatpush.bf16.msra.mxu0 %v3942_v6  ;;  %v3495_v56 = vld [vmem:[%s4862_s8 + $0x4f0] sm:$0xf0]  ;;  %v4341_v59 = vld [vmem:[%s4862_s8 + $0x5e4] sm:$0xf]  ;;  %v3370_v63 = vor.u32 %v4277_v52, %v3367_v54 }
  0x99   : > { %2322 = vmatpush.bf16.msra.mxu1 %v4070_v7  ;;  %v3623_v60 = vld [vmem:[%s4862_s8 + $0x5f0] sm:$0xf0]  ;;  %v3498_v0 = vor.u32 %v4309_v55, %v3495_v56  ;;  %v4241_v1 = vld [vmem:[%s4862_s8 + $0x2c4] sm:$0xf] }
  0x9a   : > { %2335 = vmatpush.bf16.msra.mxu2 %v2922_v8  ;;  %v3223_v2 = vld [vmem:[%s4862_s8 + $0x2d0] sm:$0xf0]  ;;  %v4273_v3 = vld [vmem:[%s4862_s8 + $0x3c4] sm:$0xf]  ;;  %v3626_v4 = vor.u32 %v4341_v59, %v3623_v60 }
  0x9b   : > { %2348 = vmatpush.bf16.msra.mxu3 %v3050_v12  ;;  %v3351_v5 = vld [vmem:[%s4862_s8 + $0x3d0] sm:$0xf0]  ;;  %v4305_v6 = vld [vmem:[%s4862_s8 + $0x4c4] sm:$0xf]  ;;  %v3226_v12 = vor.u32 %v4241_v1, %v3223_v2 }
  0x9c   : > { %2310 = vmatpush.bf16.msra.mxu0 %v3926_v18  ;;  %v3479_v7 = vld [vmem:[%s4862_s8 + $0x4d0] sm:$0xf0]  ;;  %v4337_v9 = vld [vmem:[%s4862_s8 + $0x5c4] sm:$0xf]  ;;  %v3354_v13 = vor.u32 %v4273_v3, %v3351_v5 }
  0x9d   : > { %2323 = vmatpush.bf16.msra.mxu1 %v4054_v19  ;;  %v5098_v8 = vld [vmem:[#allocation1] sm:$0xff]  ;;  %v5102_v11 = vld [vmem:[#allocation1 + $0x9] sm:$0xff]  ;;  %v3482_v14 = vor.u32 %v4305_v6, %v3479_v7  ;;  %v4237_v15 = vld [vmem:[%s4862_s8 + $0x2a4] sm:$0xf] }
  0x9e   : > { %2336 = vmatpush.bf16.msra.mxu2 %v2906_v20  ;;  %v3607_v10 = vld [vmem:[%s4862_s8 + $0x5d0] sm:$0xf0]  ;;  %v4269_v17 = vld [vmem:[%s4862_s8 + $0x3a4] sm:$0xf] }
  0x9f   : > { %2349 = vmatpush.bf16.msra.mxu3 %v3034_v24  ;;  %v3207_v16 = vld [vmem:[%s4862_s8 + $0x2b0] sm:$0xf0]  ;;  %v3610_v18 = vor.u32 %v4337_v9, %v3607_v10  ;;  %v4301_v20 = vld [vmem:[%s4862_s8 + $0x4a4] sm:$0xf] }
  0xa0   : > { %2311 = vmatpush.bf16.msra.mxu0 %v3910_v37  ;;  %v3335_v19 = vld [vmem:[%s4862_s8 + $0x3b0] sm:$0xf0]  ;;  %v4333_v22 = vld [vmem:[%s4862_s8 + $0x5a4] sm:$0xf]  ;;  %v3210_v24 = vor.u32 %v4237_v15, %v3207_v16 }
  0xa1   : > { %2324 = vmatpush.bf16.msra.mxu1 %v4038_v41  ;;  %v3463_v21 = vld [vmem:[%s4862_s8 + $0x4b0] sm:$0xf0]  ;;  %v3338_v26 = vor.u32 %v4269_v17, %v3335_v19  ;;  %v4233_v33 = vld [vmem:[%s4862_s8 + $0x284] sm:$0xf] }
  0xa2   : > { %2337 = vmatpush.bf16.msra.mxu2 %v2890_v42  ;;  %v3591_v23 = vld [vmem:[%s4862_s8 + $0x5b0] sm:$0xf0]  ;;  %v3466_v30 = vor.u32 %v4301_v20, %v3463_v21  ;;  %v4265_v36 = vld [vmem:[%s4862_s8 + $0x384] sm:$0xf] }
  0xa3   : > { %2350 = vmatpush.bf16.msra.mxu3 %v3018_v46  ;;  %v3191_v35 = vld [vmem:[%s4862_s8 + $0x290] sm:$0xf0]  ;;  %v3594_v37 = vor.u32 %v4333_v22, %v3591_v23  ;;  %v4297_v40 = vld [vmem:[%s4862_s8 + $0x484] sm:$0xf] }
  0xa4   : > { %2312 = vmatpush.bf16.msra.mxu0 %v3894_v53  ;;  %v3319_v39 = vld [vmem:[%s4862_s8 + $0x390] sm:$0xf0]  ;;  %v4329_v42 = vld [vmem:[%s4862_s8 + $0x584] sm:$0xf]  ;;  %v3194_v44 = vor.u32 %v4233_v33, %v3191_v35 }
  0xa5   : > { %2325 = vmatpush.bf16.msra.mxu1 %v4022_v57  ;;  %v3447_v41 = vld [vmem:[%s4862_s8 + $0x490] sm:$0xf0]  ;;  %v3322_v45 = vor.u32 %v4265_v36, %v3319_v39  ;;  %v4229_v47 = vld [vmem:[%s4862_s8 + $0x264] sm:$0xf] }
  0xa6   : > { %2338 = vmatpush.bf16.msra.mxu2 %v2874_v58  ;;  %v3575_v43 = vld [vmem:[%s4862_s8 + $0x590] sm:$0xf0]  ;;  %v3450_v46 = vor.u32 %v4297_v40, %v3447_v41  ;;  %v4261_v49 = vld [vmem:[%s4862_s8 + $0x364] sm:$0xf] }
  0xa7   : > { %2351 = vmatpush.bf16.msra.mxu3 %v3002_v61  ;;  %2313 = vmatmul.bf16.vlgmr.msra.gmra.mxu0 %v5098_v8  ;;  %v3175_v48 = vld [vmem:[%s4862_s8 + $0x270] sm:$0xf0]  ;;  %v3578_v50 = vor.u32 %v4329_v42, %v3575_v43  ;;  %v4293_v52 = vld [vmem:[%s4862_s8 + $0x464] sm:$0xf] }
  0xa8   : > { %2357 = vmatpush.bf16.msrb.mxu0 %v3242_v62  ;;  %2326 = vmatmul.bf16.vlgmr.msra.gmra.mxu1 %v5102_v11  ;;  %v3303_v51 = vld [vmem:[%s4862_s8 + $0x370] sm:$0xf0]  ;;  %v4325_v54 = vld [vmem:[%s4862_s8 + $0x564] sm:$0xf]  ;;  %v3178_v56 = vor.u32 %v4229_v47, %v3175_v48 }
  0xa9   : > { %2370 = vmatpush.bf16.msrb.mxu1 %v3370_v63  ;;  %2339 = vmatmul.bf16.vlgmr.msra.gmra.mxu2 %v4975_v28  ;;  %v3431_v53 = vld [vmem:[%s4862_s8 + $0x470] sm:$0xf0]  ;;  %v3306_v57 = vor.u32 %v4261_v49, %v3303_v51  ;;  %v4225_v59 = vld [vmem:[%s4862_s8 + $0x244] sm:$0xf] }
  0xaa   : > { %2383 = vmatpush.bf16.msrb.mxu2 %v3498_v0  ;;  %2352 = vmatmul.bf16.vlgmr.msra.gmra.mxu3 %v4981_v34  ;;  %v3559_v55 = vld [vmem:[%s4862_s8 + $0x570] sm:$0xf0]  ;;  %v3434_v58 = vor.u32 %v4293_v52, %v3431_v53  ;;  %v4257_v61 = vld [vmem:[%s4862_s8 + $0x344] sm:$0xf] }
  0xab   : > { %2396 = vmatpush.bf16.msrb.mxu3 %v3626_v4  ;;  %v3159_v60 = vld [vmem:[%s4862_s8 + $0x250] sm:$0xf0]  ;;  %v3562_v62 = vor.u32 %v4325_v54, %v3559_v55  ;;  %v4289_v0 = vld [vmem:[%s4862_s8 + $0x444] sm:$0xf] }
  0xac   : > { %2358 = vmatpush.bf16.msrb.mxu0 %v3226_v12  ;;  %v3287_v63 = vld [vmem:[%s4862_s8 + $0x350] sm:$0xf0]  ;;  %v4321_v2 = vld [vmem:[%s4862_s8 + $0x544] sm:$0xf]  ;;  %v3162_v4 = vor.u32 %v4225_v59, %v3159_v60 }
  0xad   : > { %2371 = vmatpush.bf16.msrb.mxu1 %v3354_v13  ;;  %v3415_v1 = vld [vmem:[%s4862_s8 + $0x450] sm:$0xf0]  ;;  %v3290_v5 = vor.u32 %v4257_v61, %v3287_v63  ;;  %v4221_v7 = vld [vmem:[%s4862_s8 + $0x224] sm:$0xf] }
  0xae   : > { %2384 = vmatpush.bf16.msrb.mxu2 %v3482_v14  ;;  %v3543_v3 = vld [vmem:[%s4862_s8 + $0x550] sm:$0xf0]  ;;  %v3418_v6 = vor.u32 %v4289_v0, %v3415_v1  ;;  %v4253_v10 = vld [vmem:[%s4862_s8 + $0x324] sm:$0xf] }
  0xaf   : > { %2397 = vmatpush.bf16.msrb.mxu3 %v3610_v18  ;;  %v3143_v9 = vld [vmem:[%s4862_s8 + $0x230] sm:$0xf0]  ;;  %v3546_v12 = vor.u32 %v4321_v2, %v3543_v3  ;;  %v4285_v14 = vld [vmem:[%s4862_s8 + $0x424] sm:$0xf] }
  0xb0   : > { %2359 = vmatpush.bf16.msrb.mxu0 %v3210_v24  ;;  %v3271_v13 = vld [vmem:[%s4862_s8 + $0x330] sm:$0xf0]  ;;  %v4317_v16 = vld [vmem:[%s4862_s8 + $0x524] sm:$0xf]  ;;  %v3146_v18 = vor.u32 %v4221_v7, %v3143_v9 }
  0xb1   : > { %2372 = vmatpush.bf16.msrb.mxu1 %v3338_v26  ;;  %v3399_v15 = vld [vmem:[%s4862_s8 + $0x430] sm:$0xf0]  ;;  %v4217_v19 = vld [vmem:[%s4862_s8 + $0x204] sm:$0xf]  ;;  %v3274_v21 = vor.u32 %v4253_v10, %v3271_v13 }
  0xb2   : > { %2385 = vmatpush.bf16.msrb.mxu2 %v3466_v30  ;;  %v3527_v17 = vld [vmem:[%s4862_s8 + $0x530] sm:$0xf0]  ;;  %v3402_v22 = vor.u32 %v4285_v14, %v3399_v15  ;;  %v4249_v23 = vld [vmem:[%s4862_s8 + $0x304] sm:$0xf] }
  0xb3   : > { %2398 = vmatpush.bf16.msrb.mxu3 %v3594_v37  ;;  %v3127_v20 = vld [vmem:[%s4862_s8 + $0x210] sm:$0xf0]  ;;  %v4281_v26 = vld [vmem:[%s4862_s8 + $0x404] sm:$0xf]  ;;  %v3530_v30 = vor.u32 %v4317_v16, %v3527_v17 }
  0xb4   : > { %2360 = vmatpush.bf16.msrb.mxu0 %v3194_v44  ;;  %v3255_v24 = vld [vmem:[%s4862_s8 + $0x310] sm:$0xf0]  ;;  %v4313_v35 = vld [vmem:[%s4862_s8 + $0x504] sm:$0xf]  ;;  %v3130_v41 = vor.u32 %v4217_v19, %v3127_v20 }
  0xb5   : > { %2373 = vmatpush.bf16.msrb.mxu1 %v3322_v45  ;;  %v3383_v33 = vld [vmem:[%s4862_s8 + $0x410] sm:$0xf0]  ;;  %v4373_v37 = vld [vmem:[%s4862_s8 + $0x6e4] sm:$0xf]  ;;  %v3258_v45 = vor.u32 %v4249_v23, %v3255_v24 }
  0xb6   : > { %2386 = vmatpush.bf16.msrb.mxu2 %v3450_v46  ;;  %v3511_v36 = vld [vmem:[%s4862_s8 + $0x510] sm:$0xf0]  ;;  %v4405_v40 = vld [vmem:[%s4862_s8 + $0x7e4] sm:$0xf]  ;;  %v3386_v46 = vor.u32 %v4281_v26, %v3383_v33 }
  0xb7   : > { %2399 = vmatpush.bf16.msrb.mxu3 %v3578_v50  ;;  %v3751_v39 = vld [vmem:[%s4862_s8 + $0x6f0] sm:$0xf0]  ;;  %v4437_v43 = vld [vmem:[%s4862_s8 + $0x8e4] sm:$0xf]  ;;  %v3514_v49 = vor.u32 %v4313_v35, %v3511_v36 }
  0xb8   : > { %2361 = vmatpush.bf16.msrb.mxu0 %v3178_v56  ;;  %v3879_v42 = vld [vmem:[%s4862_s8 + $0x7f0] sm:$0xf0]  ;;  %v4469_v47 = vld [vmem:[%s4862_s8 + $0x9e4] sm:$0xf]  ;;  %v3754_v50 = vor.u32 %v4373_v37, %v3751_v39 }
  0xb9   : > { %2374 = vmatpush.bf16.msrb.mxu1 %v3306_v57  ;;  %v4007_v44 = vld [vmem:[%s4862_s8 + $0x8f0] sm:$0xf0]  ;;  %v3882_v51 = vor.u32 %v4405_v40, %v3879_v42  ;;  %v4369_v53 = vld [vmem:[%s4862_s8 + $0x6c4] sm:$0xf] }
  0xba   : > { %2387 = vmatpush.bf16.msrb.mxu2 %v3434_v58  ;;  %v4135_v48 = vld [vmem:[%s4862_s8 + $0x9f0] sm:$0xf0]  ;;  %v4010_v52 = vor.u32 %v4437_v43, %v4007_v44  ;;  %v4401_v55 = vld [vmem:[%s4862_s8 + $0x7c4] sm:$0xf] }
  0xbb   : > { %2400 = vmatpush.bf16.msrb.mxu3 %v3562_v62  ;;  %v3735_v54 = vld [vmem:[%s4862_s8 + $0x6d0] sm:$0xf0]  ;;  %v4138_v56 = vor.u32 %v4469_v47, %v4135_v48  ;;  %v4433_v58 = vld [vmem:[%s4862_s8 + $0x8c4] sm:$0xf] }
  0xbc   : > { %2362 = vmatpush.bf16.msrb.mxu0 %v3162_v4  ;;  %v3863_v57 = vld [vmem:[%s4862_s8 + $0x7d0] sm:$0xf0]  ;;  %v4465_v60 = vld [vmem:[%s4862_s8 + $0x9c4] sm:$0xf]  ;;  %v3738_v62 = vor.u32 %v4369_v53, %v3735_v54 }
  0xbd   : > { %2375 = vmatpush.bf16.msrb.mxu1 %v3290_v5  ;;  %v3991_v59 = vld [vmem:[%s4862_s8 + $0x8d0] sm:$0xf0]  ;;  %v3866_v63 = vor.u32 %v4401_v55, %v3863_v57  ;;  %v4365_v1 = vld [vmem:[%s4862_s8 + $0x6a4] sm:$0xf] }
  0xbe   : > { %2388 = vmatpush.bf16.msrb.mxu2 %v3418_v6  ;;  %v4119_v61 = vld [vmem:[%s4862_s8 + $0x9d0] sm:$0xf0]  ;;  %v3994_v0 = vor.u32 %v4433_v58, %v3991_v59  ;;  %v4397_v3 = vld [vmem:[%s4862_s8 + $0x7a4] sm:$0xf] }
  0xbf   : > { %2401 = vmatpush.bf16.msrb.mxu3 %v3546_v12  ;;  %v3719_v2 = vld [vmem:[%s4862_s8 + $0x6b0] sm:$0xf0]  ;;  %v4122_v4 = vor.u32 %v4465_v60, %v4119_v61  ;;  %v4429_v6 = vld [vmem:[%s4862_s8 + $0x8a4] sm:$0xf] }
  0xc0   : > { %2363 = vmatpush.bf16.msrb.mxu0 %v3146_v18  ;;  %v3847_v5 = vld [vmem:[%s4862_s8 + $0x7b0] sm:$0xf0]  ;;  %v4461_v9 = vld [vmem:[%s4862_s8 + $0x9a4] sm:$0xf]  ;;  %v3722_v12 = vor.u32 %v4365_v1, %v3719_v2 }
  0xc1   : > { %2376 = vmatpush.bf16.msrb.mxu1 %v3274_v21  ;;  %v3975_v7 = vld [vmem:[%s4862_s8 + $0x8b0] sm:$0xf0]  ;;  %v3850_v13 = vor.u32 %v4397_v3, %v3847_v5  ;;  %v4361_v15 = vld [vmem:[%s4862_s8 + $0x684] sm:$0xf] }
  0xc2   : > { %2389 = vmatpush.bf16.msrb.mxu2 %v3402_v22  ;;  %v4103_v10 = vld [vmem:[%s4862_s8 + $0x9b0] sm:$0xf0]  ;;  %v3978_v14 = vor.u32 %v4429_v6, %v3975_v7  ;;  %v4393_v17 = vld [vmem:[%s4862_s8 + $0x784] sm:$0xf] }
  0xc3   : > { %2402 = vmatpush.bf16.msrb.mxu3 %v3530_v30  ;;  %v3703_v16 = vld [vmem:[%s4862_s8 + $0x690] sm:$0xf0]  ;;  %v4106_v18 = vor.u32 %v4461_v9, %v4103_v10  ;;  %v4425_v20 = vld [vmem:[%s4862_s8 + $0x884] sm:$0xf] }
  0xc4   : > { %2364 = vmatpush.bf16.msrb.mxu0 %v3130_v41  ;;  %v3831_v19 = vld [vmem:[%s4862_s8 + $0x790] sm:$0xf0]  ;;  %v4457_v22 = vld [vmem:[%s4862_s8 + $0x984] sm:$0xf]  ;;  %v3706_v24 = vor.u32 %v4361_v15, %v3703_v16 }
  0xc5   : > { %2377 = vmatpush.bf16.msrb.mxu1 %v3258_v45  ;;  %v3959_v21 = vld [vmem:[%s4862_s8 + $0x890] sm:$0xf0]  ;;  %v3834_v26 = vor.u32 %v4393_v17, %v3831_v19  ;;  %v4357_v33 = vld [vmem:[%s4862_s8 + $0x664] sm:$0xf]  ;;  %v4184_v19 = vld [vmem:[%s4862_s8 + $0xf4] sm:$0xf0] }
  0xc6   : > { %2390 = vmatpush.bf16.msrb.mxu2 %v3386_v46  ;;  %v4087_v23 = vld [vmem:[%s4862_s8 + $0x990] sm:$0xf0]  ;;  %v3962_v30 = vor.u32 %v4425_v20, %v3959_v21  ;;  %v4389_v36 = vld [vmem:[%s4862_s8 + $0x764] sm:$0xf]  ;;  %v3117_v20 = vld [vmem:[%s4862_s8 + $0x1e8] sm:$0xf] }
  0xc7   : > { %2403 = vmatpush.bf16.msrb.mxu3 %v3514_v49  ;;  %2365 = vmatmul.bf16.vlgmr.msrb.gmra.mxu0 %v4973_v27  ;;  %v3687_v35 = vld [vmem:[%s4862_s8 + $0x670] sm:$0xf0]  ;;  %v4090_v37 = vor.u32 %v4457_v22, %v4087_v23  ;;  %v4421_v40 = vld [vmem:[%s4862_s8 + $0x864] sm:$0xf]  ;;  %v4216_v22 = vld [vmem:[%s4862_s8 + $0x1f4] sm:$0xf0] }
  0xc8   : > { %2409 = vmatpush.bf16.msra.mxu0 %v3754_v50  ;;  %2378 = vmatmul.bf16.vlgmr.msrb.gmra.mxu1 %v4977_v29  ;;  %v3815_v39 = vld [vmem:[%s4862_s8 + $0x770] sm:$0xf0]  ;;  %v4453_v42 = vld [vmem:[%s4862_s8 + $0x964] sm:$0xf]  ;;  %v3690_v44 = vor.u32 %v4357_v33, %v3687_v35  ;;  %v3245_v23 = vld [vmem:[%s4862_s8 + $0x2e8] sm:$0xf] }
  0xc9   : > { %2422 = vmatpush.bf16.msra.mxu1 %v3882_v51  ;;  %2391 = vmatmul.bf16.vlgmr.msrb.gmra.mxu2 %v5027_v31  ;;  %v3943_v41 = vld [vmem:[%s4862_s8 + $0x870] sm:$0xf0]  ;;  %v3818_v45 = vor.u32 %v4389_v36, %v3815_v39  ;;  %v4353_v47 = vld [vmem:[%s4862_s8 + $0x644] sm:$0xf]  ;;  %v3373_v33 = vld [vmem:[%s4862_s8 + $0x3e8] sm:$0xf]  ;;  %v3118_v39 = vor.u32 %v4216_v22, %v3117_v20 }
  0xca   : > { %2435 = vmatpush.bf16.msra.mxu2 %v4010_v52  ;;  %2404 = vmatmul.bf16.vlgmr.msrb.gmra.mxu3 %v5033_v38  ;;  %v4071_v43 = vld [vmem:[%s4862_s8 + $0x970] sm:$0xf0]  ;;  %v3946_v46 = vor.u32 %v4421_v40, %v3943_v41  ;;  %v4385_v49 = vld [vmem:[%s4862_s8 + $0x744] sm:$0xf]  ;;  %v4280_v35 = vld [vmem:[%s4862_s8 + $0x3f4] sm:$0xf0] }
  0xcb   : > { %2448 = vmatpush.bf16.msra.mxu3 %v4138_v56  ;;  %v3671_v48 = vld [vmem:[%s4862_s8 + $0x650] sm:$0xf0]  ;;  %v4074_v50 = vor.u32 %v4453_v42, %v4071_v43  ;;  %v4417_v52 = vld [vmem:[%s4862_s8 + $0x844] sm:$0xf]  ;;  %v2973_v41 = vld [vmem:[%s4862_s8 + $0xc8] sm:$0xf] }
  0xcc   : > { %2410 = vmatpush.bf16.msra.mxu0 %v3738_v62  ;;  %v3799_v51 = vld [vmem:[%s4862_s8 + $0x750] sm:$0xf0]  ;;  %v4449_v54 = vld [vmem:[%s4862_s8 + $0x944] sm:$0xf]  ;;  %v3674_v56 = vor.u32 %v4353_v47, %v3671_v48  ;;  %v4180_v42 = vld [vmem:[%s4862_s8 + $0xd4] sm:$0xf0] }
  0xcd   : > { %2423 = vmatpush.bf16.msra.mxu1 %v3866_v63  ;;  %v3927_v53 = vld [vmem:[%s4862_s8 + $0x850] sm:$0xf0]  ;;  %v3802_v57 = vor.u32 %v4385_v49, %v3799_v51  ;;  %v4349_v59 = vld [vmem:[%s4862_s8 + $0x624] sm:$0xf]  ;;  %v3101_v43 = vld [vmem:[%s4862_s8 + $0x1c8] sm:$0xf] }
  0xce   : > { %2436 = vmatpush.bf16.msra.mxu2 %v3994_v0  ;;  %v4055_v55 = vld [vmem:[%s4862_s8 + $0x950] sm:$0xf0]  ;;  %v3930_v58 = vor.u32 %v4417_v52, %v3927_v53  ;;  %v4381_v61 = vld [vmem:[%s4862_s8 + $0x724] sm:$0xf]  ;;  %v4244_v47 = vld [vmem:[%s4862_s8 + $0x2d4] sm:$0xf0] }
  0xcf   : > { %2449 = vmatpush.bf16.msra.mxu3 %v4122_v4  ;;  %v3655_v60 = vld [vmem:[%s4862_s8 + $0x630] sm:$0xf0]  ;;  %v4058_v62 = vor.u32 %v4449_v54, %v4055_v55  ;;  %v4413_v0 = vld [vmem:[%s4862_s8 + $0x824] sm:$0xf]  ;;  %v3357_v48 = vld [vmem:[%s4862_s8 + $0x3c8] sm:$0xf] }
  0xd0   : > { %2411 = vmatpush.bf16.msra.mxu0 %v3722_v12  ;;  %v3783_v63 = vld [vmem:[%s4862_s8 + $0x730] sm:$0xf0]  ;;  %v4445_v2 = vld [vmem:[%s4862_s8 + $0x924] sm:$0xf]  ;;  %v3658_v4 = vor.u32 %v4349_v59, %v3655_v60  ;;  %v4276_v49 = vld [vmem:[%s4862_s8 + $0x3d4] sm:$0xf0] }
  0xd1   : > { %2424 = vmatpush.bf16.msra.mxu1 %v3850_v13  ;;  %v3911_v1 = vld [vmem:[%s4862_s8 + $0x830] sm:$0xf0]  ;;  %v4345_v5 = vld [vmem:[%s4862_s8 + $0x604] sm:$0xf]  ;;  %v3786_v7 = vor.u32 %v4381_v61, %v3783_v63  ;;  %v2957_v53 = vld [vmem:[%s4862_s8 + $0xa8] sm:$0xf] }
  0xd2   : > { %2437 = vmatpush.bf16.msra.mxu2 %v3978_v14  ;;  %v4039_v3 = vld [vmem:[%s4862_s8 + $0x930] sm:$0xf0]  ;;  %v3914_v9 = vor.u32 %v4413_v0, %v3911_v1  ;;  %v4377_v10 = vld [vmem:[%s4862_s8 + $0x704] sm:$0xf]  ;;  %v4176_v54 = vld [vmem:[%s4862_s8 + $0xb4] sm:$0xf0] }
  0xd3   : > { %2450 = vmatpush.bf16.msra.mxu3 %v4106_v18  ;;  %v3639_v6 = vld [vmem:[%s4862_s8 + $0x610] sm:$0xf0]  ;;  %v4409_v13 = vld [vmem:[%s4862_s8 + $0x804] sm:$0xf]  ;;  %v4042_v14 = vor.u32 %v4445_v2, %v4039_v3  ;;  %v2989_v18 = vld [vmem:[%s4862_s8 + $0xe8] sm:$0xf] }
  0xd4   : > { %2412 = vmatpush.bf16.msra.mxu0 %v3706_v24  ;;  %v3767_v12 = vld [vmem:[%s4862_s8 + $0x710] sm:$0xf0]  ;;  %v4441_v16 = vld [vmem:[%s4862_s8 + $0x904] sm:$0xf]  ;;  %v3642_v21 = vor.u32 %v4345_v5, %v3639_v6  ;;  %v4248_v24 = vld [vmem:[%s4862_s8 + $0x2f4] sm:$0xf0] }
  0xd5   : > { %2425 = vmatpush.bf16.msra.mxu1 %v3834_v26  ;;  %v3895_v15 = vld [vmem:[%s4862_s8 + $0x810] sm:$0xf0]  ;;  %v3770_v26 = vor.u32 %v4377_v10, %v3767_v12  ;;  %v3246_v40 = vor.u32 %v4248_v24, %v3245_v23  ;;  %v3085_v55 = vld [vmem:[%s4862_s8 + $0x1a8] sm:$0xf]  ;;  %v4240_v59 = vld [vmem:[%s4862_s8 + $0x2b4] sm:$0xf0] }
  0xd6   : > { %2438 = vmatpush.bf16.msra.mxu2 %v3962_v30  ;;  %v4023_v17 = vld [vmem:[%s4862_s8 + $0x910] sm:$0xf0]  ;;  %v3898_v30 = vor.u32 %v4409_v13, %v3895_v15  ;;  %v3341_v60 = vld [vmem:[%s4862_s8 + $0x3a8] sm:$0xf]  ;;  %v4272_v61 = vld [vmem:[%s4862_s8 + $0x3b4] sm:$0xf0] }
  0xd7   : > { %2451 = vmatpush.bf16.msra.mxu3 %v4090_v37  ;;  %v4026_v36 = vor.u32 %v4441_v16, %v4023_v17  ;;  %v2990_v37 = vor.u32 %v4184_v19, %v2989_v18  ;;  %v2941_v1 = vld [vmem:[%s4862_s8 + $0x88] sm:$0xf]  ;;  %v3342_v3 = vor.u32 %v4272_v61, %v3341_v60  ;;  %v4200_v17 = vld [vmem:[%s4862_s8 + $0x174] sm:$0xf0] }
  0xd8   : > { %2413 = vmatpush.bf16.msra.mxu0 %v3690_v44  ;;  %v3374_v44 = vor.u32 %v4280_v35, %v3373_v33  ;;  %v3069_v2 = vld [vmem:[%s4862_s8 + $0x188] sm:$0xf]  ;;  %v4232_v19 = vld [vmem:[%s4862_s8 + $0x274] sm:$0xf0] }
  0xd9   : > { %2426 = vmatpush.bf16.msra.mxu1 %v3818_v45  ;;  %v4212_v45 = vld [vmem:[%s4862_s8 + $0x1d4] sm:$0xf0]  ;;  %v3197_v5 = vld [vmem:[%s4862_s8 + $0x288] sm:$0xf] }
  0xda   : > { %2439 = vmatpush.bf16.msra.mxu2 %v3946_v46  ;;  %v3229_v46 = vld [vmem:[%s4862_s8 + $0x2c8] sm:$0xf]  ;;  %v3102_v51 = vor.u32 %v4212_v45, %v3101_v43  ;;  %v4196_v35 = vld [vmem:[%s4862_s8 + $0x154] sm:$0xf0] }
  0xdb   : > { %2452 = vmatpush.bf16.msra.mxu3 %v4074_v50  ;;  %v2974_v50 = vor.u32 %v4180_v42, %v2973_v41  ;;  %v3230_v52 = vor.u32 %v4244_v47, %v3229_v46  ;;  %v3325_v6 = vld [vmem:[%s4862_s8 + $0x388] sm:$0xf]  ;;  %v4260_v42 = vld [vmem:[%s4862_s8 + $0x354] sm:$0xf0] }
  0xdc   : > { %2414 = vmatpush.bf16.msra.mxu0 %v3674_v56  ;;  %v3358_v56 = vor.u32 %v4276_v49, %v3357_v48  ;;  %v2925_v13 = vld [vmem:[%s4862_s8 + $0x68] sm:$0xf]  ;;  %v4160_v47 = vld [vmem:[%s4862_s8 + $0x34] sm:$0xf0] }
  0xdd   : > { %2427 = vmatpush.bf16.msra.mxu1 %v3802_v57  ;;  %v4208_v57 = vld [vmem:[%s4862_s8 + $0x1b4] sm:$0xf0]  ;;  %v3053_v15 = vld [vmem:[%s4862_s8 + $0x168] sm:$0xf] }
  0xde   : > { %2440 = vmatpush.bf16.msra.mxu2 %v3930_v58  ;;  %v3213_v58 = vld [vmem:[%s4862_s8 + $0x2a8] sm:$0xf]  ;;  %v3086_v63 = vor.u32 %v4208_v57, %v3085_v55  ;;  %v3054_v24 = vor.u32 %v4200_v17, %v3053_v15  ;;  %v4256_v55 = vld [vmem:[%s4862_s8 + $0x334] sm:$0xf0] }
  0xdf   : > { %2453 = vmatpush.bf16.msra.mxu3 %v4058_v62  ;;  %v2958_v62 = vor.u32 %v4176_v54, %v2957_v53  ;;  %v3214_v0 = vor.u32 %v4240_v59, %v3213_v58  ;;  %v3181_v18 = vld [vmem:[%s4862_s8 + $0x268] sm:$0xf]  ;;  %v4224_v53 = vld [vmem:[%s4862_s8 + $0x234] sm:$0xf0] }
  0xe0   : > { %2415 = vmatpush.bf16.msra.mxu0 %v3658_v4  ;;  %v4204_v4 = vld [vmem:[%s4862_s8 + $0x194] sm:$0xf0]  ;;  %v3309_v20 = vld [vmem:[%s4862_s8 + $0x368] sm:$0xf] }
  0xe1   : > { %2428 = vmatpush.bf16.msra.mxu1 %v3786_v7  ;;  %v4268_v7 = vld [vmem:[%s4862_s8 + $0x394] sm:$0xf0]  ;;  %v3070_v10 = vor.u32 %v4204_v4, %v3069_v2  ;;  %v2909_v23 = vld [vmem:[%s4862_s8 + $0x48] sm:$0xf] }
  0xe2   : > { %2441 = vmatpush.bf16.msra.mxu2 %v3914_v9  ;;  %v3326_v16 = vor.u32 %v4268_v7, %v3325_v6  ;;  %v3037_v33 = vld [vmem:[%s4862_s8 + $0x148] sm:$0xf]  ;;  %v4156_v58 = vld [vmem:[%s4862_s8 + $0x14] sm:$0xf0] }
  0xe3   : > { %2454 = vmatpush.bf16.msra.mxu3 %v4042_v14  ;;  %v4168_v14 = vld [vmem:[%s4862_s8 + $0x74] sm:$0xf0]  ;;  %v3293_v41 = vld [vmem:[%s4862_s8 + $0x348] sm:$0xf]  ;;  %v3038_v45 = vor.u32 %v4196_v35, %v3037_v33 }
  0xe4   : > { %2416 = vmatpush.bf16.msra.mxu0 %v3642_v21  ;;  %v4264_v21 = vld [vmem:[%s4862_s8 + $0x374] sm:$0xf0]  ;;  %v2926_v22 = vor.u32 %v4168_v14, %v2925_v13  ;;  %v3021_v48 = vld [vmem:[%s4862_s8 + $0x128] sm:$0xf] }
  0xe5   : > { %2429 = vmatpush.bf16.msra.mxu1 %v3770_v26  ;;  %v3182_v26 = vor.u32 %v4232_v19, %v3181_v18  ;;  %v3277_v54 = vld [vmem:[%s4862_s8 + $0x328] sm:$0xf]  ;;  %v4312_v6 = vld [vmem:[%s4862_s8 + $0x4f4] sm:$0xf0] }
  0xe6   : > { %2442 = vmatpush.bf16.msra.mxu2 %v3898_v30  ;;  %v4164_v30 = vld [vmem:[%s4862_s8 + $0x54] sm:$0xf0]  ;;  %v2877_v57 = vld [vmem:[%s4862_s8 + $0x8] sm:$0xf]  ;;  %v3278_v2 = vor.u32 %v4256_v55, %v3277_v54 }
  0xe7   : > { %2455 = vmatpush.bf16.msra.mxu3 %v4026_v36  ;;  %2417 = vmatmul.bf16.vlgmr.msra.gmra.mxu0 %v5024_v25  ;;  %v3310_v36 = vor.u32 %v4264_v21, %v3309_v20  ;;  %v2910_v43 = vor.u32 %v4164_v30, %v2909_v23  ;;  %v3261_v4 = vld [vmem:[%s4862_s8 + $0x308] sm:$0xf]  ;;  %v4376_v14 = vld [vmem:[%s4862_s8 + $0x6f4] sm:$0xf0] }
  0xe8   : > { %2461 = vmatpush.bf16.msrb.mxu0 %v2990_v37  ;;  %2430 = vmatmul.bf16.vlgmr.msra.gmra.mxu1 %v5029_v32  ;;  %v3165_v37 = vld [vmem:[%s4862_s8 + $0x248] sm:$0xf]  ;;  %v4408_v18 = vld [vmem:[%s4862_s8 + $0x7f4] sm:$0xf0] }
  0xe9   : > { %2474 = vmatpush.bf16.msrb.mxu1 %v3118_v39  ;;  %2443 = vmatmul.bf16.vlgmr.msra.gmra.mxu2 %v5098_v8  ;;  %v4172_v8 = vld [vmem:[%s4862_s8 + $0x94] sm:$0xf0]  ;;  %v3629_v7 = vld [vmem:[%s4862_s8 + $0x5e8] sm:$0xf] }
  0xea   : > { %2487 = vmatpush.bf16.msrb.mxu2 %v3246_v40  ;;  %2456 = vmatmul.bf16.vlgmr.msra.gmra.mxu3 %v5102_v11  ;;  %v4236_v11 = vld [vmem:[%s4862_s8 + $0x294] sm:$0xf0]  ;;  %v2942_v9 = vor.u32 %v4172_v8, %v2941_v1  ;;  %v5278_v40 = vld [vmem:[%s5275_s24] sm:$0xf]  ;;  %v2223_v8 = vpop.f32.mrf.mxu1  ;;  %v3757_v13 = vld [vmem:[%s4862_s8 + $0x6e8] sm:$0xf] }
  0xeb   : > { %2500 = vmatpush.bf16.msrb.mxu3 %v3374_v44  ;;  %v3198_v12 = vor.u32 %v4236_v11, %v3197_v5  ;;  %v4228_v39 = vld [vmem:[%s4862_s8 + $0x254] sm:$0xf0]  ;;  %v2893_v44 = vld [vmem:[%s4862_s8 + $0x28] sm:$0xf]  ;;  %v569_v49 = vperm.slane %v5278_v40, 0 }
  0xec   : > { %2462 = vmatpush.bf16.msrb.mxu0 %v2974_v50  ;;  %v3166_v46 = vor.u32 %v4228_v39, %v3165_v37  ;;  %v3294_v50 = vor.u32 %v4260_v42, %v3293_v41  ;;  %v4252_v5 = vld [vmem:[%s4862_s8 + $0x314] sm:$0xf0]  ;;  %v3501_v11 = vld [vmem:[%s4862_s8 + $0x4e8] sm:$0xf] }
  0xed   : > { %2475 = vmatpush.bf16.msrb.mxu1 %v3102_v51  ;;  %v4192_v51 = vld [vmem:[%s4862_s8 + $0x134] sm:$0xf0]  ;;  %v3885_v17 = vld [vmem:[%s4862_s8 + $0x7e8] sm:$0xf]  ;;  %v3262_v20 = vor.u32 %v4252_v5, %v3261_v4  ;;  %v3502_v21 = vor.u32 %v4312_v6, %v3501_v11 }
  0xee   : > { %2488 = vmatpush.bf16.msrb.mxu2 %v3230_v52  ;;  %v3149_v52 = vld [vmem:[%s4862_s8 + $0x228] sm:$0xf]  ;;  %v3022_v60 = vor.u32 %v4192_v51, %v3021_v48  ;;  %v4308_v33 = vld [vmem:[%s4862_s8 + $0x4d4] sm:$0xf0] }
  0xef   : > { %2501 = vmatpush.bf16.msrb.mxu3 %v3358_v56  ;;  %v2894_v56 = vor.u32 %v4160_v47, %v2893_v44  ;;  %v3150_v61 = vor.u32 %v4224_v53, %v3149_v52  ;;  %v3485_v30 = vld [vmem:[%s4862_s8 + $0x4c8] sm:$0xf]  ;;  %v4340_v37 = vld [vmem:[%s4862_s8 + $0x5d4] sm:$0xf0] }
  0xf0   : > { %2463 = vmatpush.bf16.msrb.mxu0 %v2958_v62  ;;  %v3005_v62 = vld [vmem:[%s4862_s8 + $0x108] sm:$0xf]  ;;  %v4372_v41 = vld [vmem:[%s4862_s8 + $0x6d4] sm:$0xf0]  ;;  %v3486_v47 = vor.u32 %v4308_v33, %v3485_v30 }
  0xf1   : > { %2476 = vmatpush.bf16.msrb.mxu1 %v3086_v63  ;;  %v4188_v63 = vld [vmem:[%s4862_s8 + $0x114] sm:$0xf0]  ;;  %v3613_v35 = vld [vmem:[%s4862_s8 + $0x5c8] sm:$0xf] }
  0xf2   : > { %2489 = vmatpush.bf16.msrb.mxu2 %v3214_v0  ;;  %v3133_v0 = vld [vmem:[%s4862_s8 + $0x208] sm:$0xf]  ;;  %v3006_v15 = vor.u32 %v4188_v63, %v3005_v62  ;;  %v3614_v48 = vor.u32 %v4340_v37, %v3613_v35  ;;  %v4304_v51 = vld [vmem:[%s4862_s8 + $0x4b4] sm:$0xf0] }
  0xf3   : > { %2502 = vmatpush.bf16.msrb.mxu3 %v3342_v3  ;;  %v4220_v3 = vld [vmem:[%s4862_s8 + $0x214] sm:$0xf0]  ;;  %v3741_v39 = vld [vmem:[%s4862_s8 + $0x6c8] sm:$0xf] }
  0xf4   : > { %2464 = vmatpush.bf16.msrb.mxu0 %v2942_v9  ;;  %v3869_v44 = vld [vmem:[%s4862_s8 + $0x7c8] sm:$0xf]  ;;  %v4336_v54 = vld [vmem:[%s4862_s8 + $0x5b4] sm:$0xf0] }
  0xf5   : > { %2477 = vmatpush.bf16.msrb.mxu1 %v3070_v10  ;;  %v2210_v59 = vpop.f32.mrf.mxu0  ;;  %v2878_v10 = vor.u32 %v4156_v58, %v2877_v57  ;;  %v3597_v52 = vld [vmem:[%s4862_s8 + $0x5a8] sm:$0xf]  ;;  %v4400_v58 = vld [vmem:[%s4862_s8 + $0x7b4] sm:$0xf0] }
  0xf6   : > { %2490 = vmatpush.bf16.msrb.mxu2 %v3198_v12  ;;  %v2211_v1 = vadd.f32 %v2210_v59, %v569_v49  ;;  %v4344_v12 = vld [vmem:[%s4862_s8 + $0x5f4] sm:$0xf0]  ;;  %v3742_v49 = vor.u32 %v4372_v41, %v3741_v39  ;;  %v3725_v55 = vld [vmem:[%s4862_s8 + $0x6a8] sm:$0xf]  ;;  %v3598_v62 = vor.u32 %v4336_v54, %v3597_v52 }
  0xf7   : > { %2503 = vmatpush.bf16.msrb.mxu3 %v3326_v16  ;;  %v3134_v16 = vor.u32 %v4220_v3, %v3133_v0  ;;  %v3853_v57 = vld [vmem:[%s4862_s8 + $0x7a8] sm:$0xf]  ;;  %v4332_v3 = vld [vmem:[%s4862_s8 + $0x594] sm:$0xf0] }
  0xf8   : > { %2465 = vmatpush.bf16.msrb.mxu0 %v2926_v22  ;;  %v2224_v9 = vadd.f32 %v2223_v8, %v2211_v1  ;;  %v3453_v0 = vld [vmem:[%s4862_s8 + $0x488] sm:$0xf]  ;;  %v4300_v1 = vld [vmem:[%s4862_s8 + $0x494] sm:$0xf0] }
  0xf9   : > { %2478 = vmatpush.bf16.msrb.mxu1 %v3054_v24  ;;  %v3630_v24 = vor.u32 %v4344_v12, %v3629_v7  ;;  %v3581_v8 = vld [vmem:[%s4862_s8 + $0x588] sm:$0xf]  ;;  %v4364_v5 = vld [vmem:[%s4862_s8 + $0x694] sm:$0xf0]  ;;  %v3454_v7 = vor.u32 %v4300_v1, %v3453_v0 }
  0xfa   : > { %2491 = vmatpush.bf16.msrb.mxu2 %v3182_v26  ;;  %v3758_v26 = vor.u32 %v4376_v14, %v3757_v13  ;;  %v3709_v4 = vld [vmem:[%s4862_s8 + $0x688] sm:$0xf]  ;;  %v4396_v6 = vld [vmem:[%s4862_s8 + $0x794] sm:$0xf0] }
  0xfb   : > { %2504 = vmatpush.bf16.msrb.mxu3 %v3310_v36  ;;  %v3886_v36 = vor.u32 %v4408_v18, %v3885_v17  ;;  %v3837_v11 = vld [vmem:[%s4862_s8 + $0x788] sm:$0xf]  ;;  %v3710_v12 = vor.u32 %v4364_v5, %v3709_v4  ;;  %v4296_v14 = vld [vmem:[%s4862_s8 + $0x474] sm:$0xf0] }
  0xfc   : > { %2466 = vmatpush.bf16.msrb.mxu0 %v2910_v43  ;;  %v2236_v19 = vpop.f32.mrf.mxu2  ;;  %v2249_v23 = vpop.f32.mrf.mxu3  ;;  %v3437_v13 = vld [vmem:[%s4862_s8 + $0x468] sm:$0xf]  ;;  %v3838_v18 = vor.u32 %v4396_v6, %v3837_v11  ;;  %v4316_v5 = vld [vmem:[%s4862_s8 + $0x514] sm:$0xf0] }
  0xfd   : > { %2479 = vmatpush.bf16.msrb.mxu1 %v3038_v45  ;;  %v2237_v22 = vadd.f32 %v2236_v19, %v2224_v9  ;;  %v2212_v43 = vpop.f32.mrf.mxu0  ;;  %v4404_v45 = vld [vmem:[%s4862_s8 + $0x7d4] sm:$0xf0]  ;;  %v3421_v35 = vld [vmem:[%s4862_s8 + $0x448] sm:$0xf] }
  0xfe   : > { %2492 = vmatpush.bf16.msrb.mxu2 %v3166_v46  ;;  %v2225_v46 = vpop.f32.mrf.mxu1  ;;  %v3870_v53 = vor.u32 %v4404_v45, %v3869_v44  ;;  %v4328_v19 = vld [vmem:[%s4862_s8 + $0x574] sm:$0xf0]  ;;  %v3549_v37 = vld [vmem:[%s4862_s8 + $0x548] sm:$0xf] }
  0xff   : > { %2505 = vmatpush.bf16.msrb.mxu3 %v3294_v50  ;;  %v2250_v42 = vadd.f32 %v2249_v23, %v2237_v22  ;;  %v3469_v50 = vld [vmem:[%s4862_s8 + $0x4a8] sm:$0xf]  ;;  %v4392_v23 = vld [vmem:[%s4862_s8 + $0x774] sm:$0xf0] }
 0x100   : > { %2467 = vmatpush.bf16.msrb.mxu0 %v2894_v56  ;;  %v4368_v56 = vld [vmem:[%s4862_s8 + $0x6b4] sm:$0xf0]  ;;  %v3821_v22 = vld [vmem:[%s4862_s8 + $0x768] sm:$0xf] }
 0x101   : > { %2480 = vmatpush.bf16.msrb.mxu1 %v3022_v60  ;;  %v3470_v60 = vor.u32 %v4304_v51, %v3469_v50  ;;  %v3726_v63 = vor.u32 %v4368_v56, %v3725_v55  ;;  %v3822_v41 = vor.u32 %v4392_v23, %v3821_v22  ;;  %v3677_v43 = vld [vmem:[%s4862_s8 + $0x648] sm:$0xf]  ;;  %v4356_v44 = vld [vmem:[%s4862_s8 + $0x654] sm:$0xf0]  ;;  %v4214_v23 = vld [vmem:[%s4862_s8 + $0x1ec] sm:$0xf] }
 0x102   : > { %2493 = vmatpush.bf16.msrb.mxu2 %v3150_v61  ;;  %v3405_v54 = vld [vmem:[%s4862_s8 + $0x428] sm:$0xf]  ;;  %v4288_v55 = vld [vmem:[%s4862_s8 + $0x434] sm:$0xf0] }
 0x103   : > { %2506 = vmatpush.bf16.msrb.mxu3 %v3278_v2  ;;  %v3854_v2 = vor.u32 %v4400_v58, %v3853_v57  ;;  %v3533_v56 = vld [vmem:[%s4862_s8 + $0x528] sm:$0xf]  ;;  %v3406_v0 = vor.u32 %v4288_v55, %v3405_v54  ;;  %v4464_v55 = vld [vmem:[%s4862_s8 + $0x9b4] sm:$0xf0] }
 0x104   : > { %2468 = vmatpush.bf16.msrb.mxu0 %v2878_v10  ;;  %v2238_v59 = vpop.f32.mrf.mxu2  ;;  %v2251_v61 = vpop.f32.mrf.mxu3  ;;  %v3582_v10 = vor.u32 %v4332_v3, %v3581_v8  ;;  %v3389_v1 = vld [vmem:[%s4862_s8 + $0x408] sm:$0xf]  ;;  %v4284_v8 = vld [vmem:[%s4862_s8 + $0x414] sm:$0xf0] }
 0x105   : > { %2481 = vmatpush.bf16.msrb.mxu1 %v3006_v15  ;;  %v3565_v15 = vld [vmem:[%s4862_s8 + $0x568] sm:$0xf]  ;;  %v4320_v59 = vld [vmem:[%s4862_s8 + $0x534] sm:$0xf0] }
 0x106   : > { %2494 = vmatpush.bf16.msrb.mxu2 %v3134_v16  ;;  %v3566_v30 = vor.u32 %v4328_v19, %v3565_v15  ;;  %v4352_v61 = vld [vmem:[%s4862_s8 + $0x634] sm:$0xf0]  ;;  %v3517_v4 = vld [vmem:[%s4862_s8 + $0x508] sm:$0xf]  ;;  %v4182_v19 = vld [vmem:[%s4862_s8 + $0xec] sm:$0xf] }
 0x107   : > { %2507 = vmatpush.bf16.msrb.mxu3 %v3262_v20  ;;  %2469 = vmatmul.bf16.vlgmr.msrb.gmra.mxu0 %v4975_v28  ;;  %v2262_v9 = vpop.f32.mrf.mxu0  ;;  %v3693_v20 = vld [vmem:[%s4862_s8 + $0x668] sm:$0xf]  ;;  %v4440_v15 = vld [vmem:[%s4862_s8 + $0x8f4] sm:$0xf0] }
 0x108   : > { %2513 = vmatpush.bf16.msra.mxu0 %v3502_v21  ;;  %2482 = vmatmul.bf16.vlgmr.msrb.gmra.mxu1 %v4981_v34  ;;  %v2263_v16 = vadd.f32 %v2262_v9, %v2250_v42  ;;  %v2275_v17 = vpop.f32.mrf.mxu1  ;;  %v4360_v21 = vld [vmem:[%s4862_s8 + $0x674] sm:$0xf0]  ;;  %v3645_v11 = vld [vmem:[%s4862_s8 + $0x608] sm:$0xf] }
 0x109   : > { %2526 = vmatpush.bf16.msra.mxu1 %v3630_v24  ;;  %2495 = vmatmul.bf16.vlgmr.msrb.gmra.mxu2 %v4973_v27  ;;  %v3694_v33 = vor.u32 %v4360_v21, %v3693_v20  ;;  %v4324_v42 = vld [vmem:[%s4862_s8 + $0x554] sm:$0xf0]  ;;  %v2991_v20 = vld [vmem:[%s4862_s8 + $0xf8] sm:$0xf0]  ;;  %v3518_v21 = vor.u32 %v4316_v5, %v3517_v4 }
 0x10a   : > { %2539 = vmatpush.bf16.msra.mxu2 %v3758_v26  ;;  %2508 = vmatmul.bf16.vlgmr.msrb.gmra.mxu3 %v4977_v29  ;;  %v2276_v24 = vadd.f32 %v2275_v17, %v2263_v16  ;;  %v3438_v26 = vor.u32 %v4296_v14, %v3437_v13  ;;  %v3550_v52 = vor.u32 %v4324_v42, %v3549_v37  ;;  %v4348_v9 = vld [vmem:[%s4862_s8 + $0x614] sm:$0xf0]  ;;  %v4013_v14 = vld [vmem:[%s4862_s8 + $0x8e8] sm:$0xf]  ;;  %v2943_v4 = vld [vmem:[%s4862_s8 + $0x98] sm:$0xf0] }
 0x10b   : > { %2552 = vmatpush.bf16.msra.mxu3 %v3886_v36  ;;  %v4292_v36 = vld [vmem:[%s4862_s8 + $0x454] sm:$0xf0]  ;;  %v4141_v16 = vld [vmem:[%s4862_s8 + $0x9e8] sm:$0xf]  ;;  %v3390_v17 = vor.u32 %v4284_v8, %v3389_v1  ;;  %v3646_v22 = vor.u32 %v4348_v9, %v3645_v11  ;;  %v4202_v11 = vld [vmem:[%s4862_s8 + $0x18c] sm:$0xf] }
 0x10c   : > { %2514 = vmatpush.bf16.msra.mxu0 %v3486_v47  ;;  %v2288_v39 = vpop.f32.mrf.mxu2  ;;  %v3805_v47 = vld [vmem:[%s4862_s8 + $0x748] sm:$0xf]  ;;  %v4436_v37 = vld [vmem:[%s4862_s8 + $0x8d4] sm:$0xf0] }
 0x10d   : > { %2527 = vmatpush.bf16.msra.mxu1 %v3614_v48  ;;  %v2289_v45 = vadd.f32 %v2288_v39, %v2276_v24  ;;  %v4388_v48 = vld [vmem:[%s4862_s8 + $0x754] sm:$0xf0]  ;;  %v3119_v24 = vld [vmem:[%s4862_s8 + $0x1f8] sm:$0xf0]  ;;  %v4125_v39 = vld [vmem:[%s4862_s8 + $0x9c8] sm:$0xf] }
 0x10e   : > { %2540 = vmatpush.bf16.msra.mxu2 %v3742_v49  ;;  %v3422_v49 = vor.u32 %v4292_v36, %v3421_v35  ;;  %v3806_v58 = vor.u32 %v4388_v48, %v3805_v47  ;;  %v2994_v35 = vor.u32 %v4182_v19, %v2991_v20  ;;  %v3997_v36 = vld [vmem:[%s4862_s8 + $0x8c8] sm:$0xf]  ;;  %v4468_v42 = vld [vmem:[%s4862_s8 + $0x9d4] sm:$0xf0]  ;;  %v2927_v20 = vld [vmem:[%s4862_s8 + $0x78] sm:$0xf0] }
 0x10f   : > { %2553 = vmatpush.bf16.msra.mxu3 %v3870_v53  ;;  %v2301_v46 = vpop.f32.mrf.mxu3  ;;  %v2264_v51 = vpop.f32.mrf.mxu0  ;;  %v3678_v53 = vor.u32 %v4356_v44, %v3677_v43  ;;  %v4178_v43 = vld [vmem:[%s4862_s8 + $0xcc] sm:$0xf]  ;;  %v2975_v44 = vld [vmem:[%s4862_s8 + $0xd8] sm:$0xf0]  ;;  %v3998_v47 = vor.u32 %v4436_v37, %v3997_v36  ;;  %v4126_v48 = vor.u32 %v4468_v42, %v4125_v39  ;;  %v4093_v1 = vld [vmem:[%s4862_s8 + $0x988] sm:$0xf] }
 0x110   : > { %2515 = vmatpush.bf16.msra.mxu0 %v3470_v60  ;;  %v5351_v50 = vadd.f32 %v2301_v46, %v2289_v45  ;;  %v2277_v57 = vpop.f32.mrf.mxu1  ;;  %v3661_v60 = vld [vmem:[%s4862_s8 + $0x628] sm:$0xf]  ;;  %v4210_v45 = vld [vmem:[%s4862_s8 + $0x1cc] sm:$0xf]  ;;  %v3103_v46 = vld [vmem:[%s4862_s8 + $0x1d8] sm:$0xf0] }
 0x111   : > { %2528 = vmatpush.bf16.msra.mxu1 %v3598_v62  ;;  %v3789_v62 = vld [vmem:[%s4862_s8 + $0x728] sm:$0xf]  ;;  %v3662_v3 = vor.u32 %v4352_v61, %v3661_v60  ;;  %v3106_v54 = vor.u32 %v4210_v45, %v3103_v46  ;;  %v2959_v57 = vld [vmem:[%s4862_s8 + $0xb8] sm:$0xf0]  ;;  %v4456_v19 = vld [vmem:[%s4862_s8 + $0x974] sm:$0xf0] }
 0x112   : > { %2541 = vmatpush.bf16.msra.mxu2 %v3726_v63  ;;  %v4384_v63 = vld [vmem:[%s4862_s8 + $0x734] sm:$0xf0]  ;;  %v3981_v51 = vld [vmem:[%s4862_s8 + $0x8a8] sm:$0xf]  ;;  %v2911_v42 = vld [vmem:[%s4862_s8 + $0x58] sm:$0xf0] }
 0x113   : > { %2554 = vmatpush.bf16.msra.mxu3 %v3854_v2  ;;  %v3534_v2 = vor.u32 %v4320_v59, %v3533_v56  ;;  %v4174_v56 = vld [vmem:[%s4862_s8 + $0xac] sm:$0xf]  ;;  %v3087_v59 = vld [vmem:[%s4862_s8 + $0x1b8] sm:$0xf0]  ;;  %v4061_v36 = vld [vmem:[%s4862_s8 + $0x948] sm:$0xf] }
 0x114   : > { %2516 = vmatpush.bf16.msra.mxu0 %v3454_v7  ;;  %v2290_v6 = vpop.f32.mrf.mxu2  ;;  %v3790_v7 = vor.u32 %v4384_v63, %v3789_v62  ;;  %v2962_v62 = vor.u32 %v4174_v56, %v2959_v57  ;;  %v3965_v63 = vld [vmem:[%s4862_s8 + $0x888] sm:$0xf]  ;;  %v4452_v39 = vld [vmem:[%s4862_s8 + $0x954] sm:$0xf0] }
 0x115   : > { %2529 = vmatpush.bf16.msra.mxu1 %v3582_v10  ;;  %v3773_v10 = vld [vmem:[%s4862_s8 + $0x708] sm:$0xf]  ;;  %v3071_v6 = vld [vmem:[%s4862_s8 + $0x198] sm:$0xf0] }
 0x116   : > { %2542 = vmatpush.bf16.msra.mxu2 %v3710_v12  ;;  %v4380_v12 = vld [vmem:[%s4862_s8 + $0x714] sm:$0xf0] }
 0x117   : > { %2555 = vmatpush.bf16.msra.mxu3 %v3838_v18  ;;  %v2303_v13 = vpop.f32.mrf.mxu3  ;;  %v4472_v18 = vld [vmem:[%s4862_s8 + $0x9f4] sm:$0xf0] }
 0x118   : > { %2517 = vmatpush.bf16.msra.mxu0 %v3438_v26  ;;  %v3774_v26 = vor.u32 %v4380_v12, %v3773_v10 }
 0x119   : > { %2530 = vmatpush.bf16.msra.mxu1 %v3566_v30  ;;  %v4014_v30 = vor.u32 %v4440_v15, %v4013_v14  ;;  %v3949_v14 = vld [vmem:[%s4862_s8 + $0x868] sm:$0xf]  ;;  %v4424_v15 = vld [vmem:[%s4862_s8 + $0x874] sm:$0xf0] }
 0x11a   : > { %2543 = vmatpush.bf16.msra.mxu2 %v3694_v33  ;;  %v4142_v33 = vor.u32 %v4472_v18, %v4141_v16  ;;  %v4077_v16 = vld [vmem:[%s4862_s8 + $0x968] sm:$0xf] }
 0x11b   : > { %2556 = vmatpush.bf16.msra.mxu3 %v3822_v41  ;;  %v3122_v41 = vor.u32 %v4214_v23, %v3119_v24  ;;  %v570_v23 = vperm.slane %v5278_v40, 1  ;;  %v3950_v24 = vor.u32 %v4424_v15, %v3949_v14  ;;  %v4278_v14 = vld [vmem:[%s4862_s8 + $0x3ec] sm:$0xf] }
 0x11c   : > { %2518 = vmatpush.bf16.msra.mxu0 %v3422_v49  ;;  %v2978_v49 = vor.u32 %v4178_v43, %v2975_v44  ;;  %v4194_v43 = vld [vmem:[%s4862_s8 + $0x14c] sm:$0xf]  ;;  %v3039_v44 = vld [vmem:[%s4862_s8 + $0x158] sm:$0xf0] }
 0x11d   : > { %2531 = vmatpush.bf16.msra.mxu1 %v3550_v52  ;;  %v4432_v52 = vld [vmem:[%s4862_s8 + $0x8b4] sm:$0xf0]  ;;  %v3042_v57 = vor.u32 %v4194_v43, %v3039_v44  ;;  %v4338_v43 = vld [vmem:[%s4862_s8 + $0x5cc] sm:$0xf]  ;;  %v3615_v44 = vld [vmem:[%s4862_s8 + $0x5d8] sm:$0xf0] }
 0x11e   : > { %2544 = vmatpush.bf16.msra.mxu2 %v3678_v53  ;;  %v4109_v53 = vld [vmem:[%s4862_s8 + $0x9a8] sm:$0xf]  ;;  %v3982_v60 = vor.u32 %v4432_v52, %v3981_v51  ;;  %v4062_v51 = vor.u32 %v4452_v39, %v4061_v36  ;;  %v3231_v36 = vld [vmem:[%s4862_s8 + $0x2d8] sm:$0xf0] }
 0x11f   : > { %2557 = vmatpush.bf16.msra.mxu3 %v3806_v58  ;;  %v4206_v58 = vld [vmem:[%s4862_s8 + $0x1ac] sm:$0xf]  ;;  %v4110_v61 = vor.u32 %v4464_v55, %v4109_v53  ;;  %v3917_v53 = vld [vmem:[%s4862_s8 + $0x828] sm:$0xf] }
 0x120   : > { %2519 = vmatpush.bf16.msra.mxu0 %v3406_v0  ;;  %v4428_v0 = vld [vmem:[%s4862_s8 + $0x894] sm:$0xf0]  ;;  %v3090_v8 = vor.u32 %v4206_v58, %v3087_v59  ;;  %v4045_v55 = vld [vmem:[%s4862_s8 + $0x928] sm:$0xf]  ;;  %v4158_v59 = vld [vmem:[%s4862_s8 + $0x2c] sm:$0xf] }
 0x121   : > { %2532 = vmatpush.bf16.msra.mxu1 %v3534_v2  ;;  %v4460_v2 = vld [vmem:[%s4862_s8 + $0x994] sm:$0xf0]  ;;  %v3966_v9 = vor.u32 %v4428_v0, %v3965_v63  ;;  %v3901_v0 = vld [vmem:[%s4862_s8 + $0x808] sm:$0xf] }
 0x122   : > { %2545 = vmatpush.bf16.msra.mxu2 %v3662_v3  ;;  %v4170_v3 = vld [vmem:[%s4862_s8 + $0x8c] sm:$0xf]  ;;  %v4094_v12 = vor.u32 %v4460_v2, %v4093_v1  ;;  %v4448_v58 = vld [vmem:[%s4862_s8 + $0x934] sm:$0xf0] }
 0x123   : > { %2558 = vmatpush.bf16.msra.mxu3 %v3790_v7  ;;  %v2946_v13 = vor.u32 %v4170_v3, %v2943_v4  ;;  %v4412_v1 = vld [vmem:[%s4862_s8 + $0x814] sm:$0xf0]  ;;  %v4029_v3 = vld [vmem:[%s4862_s8 + $0x908] sm:$0xf] }
 0x124   : > { %2520 = vmatpush.bf16.msra.mxu0 %v3390_v17  ;;  %v2314_v5 = vpop.f32.mrf.mxu0  ;;  %v3074_v17 = vor.u32 %v4202_v11, %v3071_v6  ;;  %v4444_v4 = vld [vmem:[%s4862_s8 + $0x914] sm:$0xf0]  ;;  %v2879_v6 = vld [vmem:[%s4862_s8 + $0x18] sm:$0xf0] }
 0x125   : > { %2533 = vmatpush.bf16.msra.mxu1 %v3518_v21  ;;  %v2315_v7 = vadd.f32 %v2314_v5, %v5351_v50  ;;  %v2327_v10 = vpop.f32.mrf.mxu1  ;;  %v4166_v50 = vld [vmem:[%s4862_s8 + $0x6c] sm:$0xf] }
 0x126   : > { %2546 = vmatpush.bf16.msra.mxu2 %v3646_v22  ;;  %v4198_v21 = vld [vmem:[%s4862_s8 + $0x16c] sm:$0xf]  ;;  %v3055_v22 = vld [vmem:[%s4862_s8 + $0x178] sm:$0xf0] }
 0x127   : > { %2559 = vmatpush.bf16.msra.mxu3 %v3774_v26  ;;  %2521 = vmatmul.bf16.vlgmr.msra.gmra.mxu0 %v5027_v31  ;;  %v5409_v18 = vadd.f32 %v2327_v10, %v2315_v7  ;;  %v4078_v26 = vor.u32 %v4456_v19, %v4077_v16  ;;  %v3058_v37 = vor.u32 %v4198_v21, %v3055_v22  ;;  %v4154_v5 = vld [vmem:[%s4862_s8 + $0xc] sm:$0xf] }
 0x128   : > { %2565 = vmatpush.bf16.msrb.mxu0 %v4014_v30  ;;  %2534 = vmatmul.bf16.vlgmr.msra.gmra.mxu1 %v5033_v38  ;;  %v2930_v30 = vor.u32 %v4166_v50, %v2927_v20  ;;  %v4186_v7 = vld [vmem:[%s4862_s8 + $0x10c] sm:$0xf]  ;;  %v3902_v16 = vor.u32 %v4412_v1, %v3901_v0  ;;  %v3503_v50 = vld [vmem:[%s4862_s8 + $0x4f8] sm:$0xf0]  ;;  %v4030_v20 = vor.u32 %v4444_v4, %v4029_v3 }
 0x129   : > { %2578 = vmatpush.bf16.msrb.mxu1 %v4142_v33  ;;  %2547 = vmatmul.bf16.vlgmr.msra.gmra.mxu2 %v5024_v25  ;;  %v3933_v33 = vld [vmem:[%s4862_s8 + $0x848] sm:$0xf]  ;;  %v4310_v19 = vld [vmem:[%s4862_s8 + $0x4ec] sm:$0xf]  ;;  %v2882_v21 = vor.u32 %v4154_v5, %v2879_v6  ;;  %v3199_v1 = vld [vmem:[%s4862_s8 + $0x298] sm:$0xf0] }
 0x12a   : > { %2591 = vmatpush.bf16.msrb.mxu2 %v2994_v35  ;;  %2560 = vmatmul.bf16.vlgmr.msra.gmra.mxu3 %v5029_v32  ;;  %v4420_v35 = vld [vmem:[%s4862_s8 + $0x854] sm:$0xf0]  ;;  %v4342_v22 = vld [vmem:[%s4862_s8 + $0x5ec] sm:$0xf]  ;;  %v3327_v3 = vld [vmem:[%s4862_s8 + $0x398] sm:$0xf0] }
 0x12b   : > { %2604 = vmatpush.bf16.msrb.mxu3 %v3122_v41  ;;  %v4162_v41 = vld [vmem:[%s4862_s8 + $0x4c] sm:$0xf]  ;;  %v3455_v4 = vld [vmem:[%s4862_s8 + $0x498] sm:$0xf0] }
 0x12c   : > { %2566 = vmatpush.bf16.msrb.mxu0 %v3998_v47  ;;  %v2340_v40 = vpop.f32.mrf.mxu2  ;;  %v2316_v47 = vpop.f32.mrf.mxu0  ;;  %v2914_v52 = vor.u32 %v4162_v41, %v2911_v42  ;;  %v3359_v41 = vld [vmem:[%s4862_s8 + $0x3d8] sm:$0xf0]  ;;  %v4306_v42 = vld [vmem:[%s4862_s8 + $0x4cc] sm:$0xf] }
 0x12d   : > { %2579 = vmatpush.bf16.msrb.mxu1 %v4126_v48  ;;  %v2341_v45 = vadd.f32 %v2340_v40, %v570_v23  ;;  %v2353_v46 = vpop.f32.mrf.mxu3  ;;  %v3934_v48 = vor.u32 %v4420_v35, %v3933_v33  ;;  %v3631_v23 = vld [vmem:[%s4862_s8 + $0x5f8] sm:$0xf0]  ;;  %v3506_v33 = vor.u32 %v4310_v19, %v3503_v50  ;;  %v4242_v35 = vld [vmem:[%s4862_s8 + $0x2cc] sm:$0xf] }
 0x12e   : > { %2592 = vmatpush.bf16.msrb.mxu2 %v2978_v49  ;;  %v2329_v49 = vpop.f32.mrf.mxu1  ;;  %v3634_v39 = vor.u32 %v4342_v22, %v3631_v23  ;;  %v3487_v40 = vld [vmem:[%s4862_s8 + $0x4d8] sm:$0xf0]  ;;  %v4234_v0 = vld [vmem:[%s4862_s8 + $0x28c] sm:$0xf] }
 0x12f   : > { %2605 = vmatpush.bf16.msrb.mxu3 %v3106_v54  ;;  %v4416_v54 = vld [vmem:[%s4862_s8 + $0x834] sm:$0xf0]  ;;  %v5428_v56 = vadd.f32 %v2353_v46, %v2341_v45  ;;  %v3234_v45 = vor.u32 %v4242_v35, %v3231_v36  ;;  %v3490_v47 = vor.u32 %v4306_v42, %v3487_v40  ;;  %v3215_v49 = vld [vmem:[%s4862_s8 + $0x2b8] sm:$0xf0]  ;;  %v4330_v5 = vld [vmem:[%s4862_s8 + $0x58c] sm:$0xf] }
 0x130   : > { %2567 = vmatpush.bf16.msrb.mxu0 %v3982_v60  ;;  %v2895_v60 = vld [vmem:[%s4862_s8 + $0x38] sm:$0xf0]  ;;  %v3918_v63 = vor.u32 %v4416_v54, %v3917_v53  ;;  %v3618_v53 = vor.u32 %v4338_v43, %v3615_v44  ;;  %v4294_v19 = vld [vmem:[%s4862_s8 + $0x46c] sm:$0xf] }
 0x131   : > { %2580 = vmatpush.bf16.msrb.mxu1 %v4110_v61  ;;  %v4190_v61 = vld [vmem:[%s4862_s8 + $0x12c] sm:$0xf]  ;;  %v2898_v2 = vor.u32 %v4158_v59, %v2895_v60  ;;  %v3343_v54 = vld [vmem:[%s4862_s8 + $0x3b8] sm:$0xf0] }
 0x132   : > { %2593 = vmatpush.bf16.msrb.mxu2 %v2962_v62  ;;  %v3023_v62 = vld [vmem:[%s4862_s8 + $0x138] sm:$0xf0]  ;;  %v4334_v59 = vld [vmem:[%s4862_s8 + $0x5ac] sm:$0xf] }
 0x133   : > { %2606 = vmatpush.bf16.msrb.mxu3 %v3090_v8  ;;  %v4046_v8 = vor.u32 %v4448_v58, %v4045_v55  ;;  %v3026_v11 = vor.u32 %v4190_v61, %v3023_v62  ;;  %v4302_v55 = vld [vmem:[%s4862_s8 + $0x4ac] sm:$0xf]  ;;  %v5468_v58 = vld [vmem:[#allocation1 + $0x9] sm:$0xff] }
 0x134   : > { %2568 = vmatpush.bf16.msrb.mxu0 %v3966_v9  ;;  %v3007_v9 = vld [vmem:[%s4862_s8 + $0x118] sm:$0xf0]  ;;  %v2342_v10 = vpop.f32.mrf.mxu2  ;;  %v4322_v43 = vld [vmem:[%s4862_s8 + $0x54c] sm:$0xf] }
 0x135   : > { %2581 = vmatpush.bf16.msrb.mxu1 %v4094_v12  ;;  %v4246_v12 = vld [vmem:[%s4862_s8 + $0x2ec] sm:$0xf]  ;;  %v2355_v15 = vpop.f32.mrf.mxu3  ;;  %v3599_v60 = vld [vmem:[%s4862_s8 + $0x5b8] sm:$0xf0] }
 0x136   : > { %2594 = vmatpush.bf16.msrb.mxu2 %v2946_v13  ;;  %v3247_v13 = vld [vmem:[%s4862_s8 + $0x2f8] sm:$0xf0]  ;;  %v4230_v10 = vld [vmem:[%s4862_s8 + $0x26c] sm:$0xf] }
 0x137   : > { %2607 = vmatpush.bf16.msrb.mxu3 %v3074_v17  ;;  %v3375_v17 = vld [vmem:[%s4862_s8 + $0x3f8] sm:$0xf0] }
 0x138   : > { %2569 = vmatpush.bf16.msrb.mxu0 %v3950_v24  ;;  %v3010_v24 = vor.u32 %v4186_v7, %v3007_v9  ;;  %v3439_v50 = vld [vmem:[%s4862_s8 + $0x478] sm:$0xf0] }
 0x139   : > { %2582 = vmatpush.bf16.msrb.mxu1 %v4078_v26  ;;  %v3250_v26 = vor.u32 %v4246_v12, %v3247_v13  ;;  %v3183_v12 = vld [vmem:[%s4862_s8 + $0x278] sm:$0xf0]  ;;  %v4262_v13 = vld [vmem:[%s4862_s8 + $0x36c] sm:$0xf] }
 0x13a   : > { %2595 = vmatpush.bf16.msrb.mxu2 %v2930_v30  ;;  %v3378_v30 = vor.u32 %v4278_v14, %v3375_v17  ;;  %v3311_v17 = vld [vmem:[%s4862_s8 + $0x378] sm:$0xf0]  ;;  %v3186_v23 = vor.u32 %v4230_v10, %v3183_v12  ;;  %v4374_v12 = vld [vmem:[%s4862_s8 + $0x6ec] sm:$0xf] }
 0x13b   : > { %2608 = vmatpush.bf16.msrb.mxu3 %v3058_v37  ;;  %v4274_v37 = vld [vmem:[%s4862_s8 + $0x3cc] sm:$0xf]  ;;  %v3551_v44 = vld [vmem:[%s4862_s8 + $0x558] sm:$0xf0] }
 0x13c   : > { %2570 = vmatpush.bf16.msrb.mxu0 %v3934_v48  ;;  %v3362_v46 = vor.u32 %v4274_v37, %v3359_v41  ;;  %v4238_v48 = vld [vmem:[%s4862_s8 + $0x2ac] sm:$0xf]  ;;  %v3295_v37 = vld [vmem:[%s4862_s8 + $0x358] sm:$0xf0] }
 0x13d   : > { %2583 = vmatpush.bf16.msrb.mxu1 %v4062_v51  ;;  %v4270_v51 = vld [vmem:[%s4862_s8 + $0x3ac] sm:$0xf]  ;;  %v3218_v61 = vor.u32 %v4238_v48, %v3215_v49  ;;  %v3423_v41 = vld [vmem:[%s4862_s8 + $0x458] sm:$0xf0] }
 0x13e   : > { %2596 = vmatpush.bf16.msrb.mxu2 %v2914_v52  ;;  %v5462_v52 = vld [vmem:[#allocation1] sm:$0xff]  ;;  %v3346_v62 = vor.u32 %v4270_v51, %v3343_v54 }
 0x13f   : > { %2609 = vmatpush.bf16.msrb.mxu3 %v3042_v57  ;;  %v3471_v57 = vld [vmem:[%s4862_s8 + $0x4b8] sm:$0xf0]  ;;  %v4222_v51 = vld [vmem:[%s4862_s8 + $0x22c] sm:$0xf] }
 0x140   : > { %2571 = vmatpush.bf16.msrb.mxu0 %v3918_v63  ;;  %v3474_v63 = vor.u32 %v4302_v55, %v3471_v57  ;;  %v4254_v54 = vld [vmem:[%s4862_s8 + $0x32c] sm:$0xf]  ;;  %v3554_v57 = vor.u32 %v4322_v43, %v3551_v44 }
 0x141   : > { %2584 = vmatpush.bf16.msrb.mxu1 %v4046_v8  ;;  %v4266_v8 = vld [vmem:[%s4862_s8 + $0x38c] sm:$0xf] }
 0x142   : > { %2597 = vmatpush.bf16.msrb.mxu2 %v2898_v2  ;;  %v3602_v2 = vor.u32 %v4334_v59, %v3599_v60  ;;  %v3330_v7 = vor.u32 %v4266_v8, %v3327_v3  ;;  %v3279_v59 = vld [vmem:[%s4862_s8 + $0x338] sm:$0xf0]  ;;  %v4286_v60 = vld [vmem:[%s4862_s8 + $0x42c] sm:$0xf] }
 0x143   : > { %2610 = vmatpush.bf16.msrb.mxu3 %v3026_v11  ;;  %v3583_v11 = vld [vmem:[%s4862_s8 + $0x598] sm:$0xf0] }
 0x144   : > { %2572 = vmatpush.bf16.msrb.mxu0 %v3902_v16  ;;  %v2366_v6 = vpop.f32.mrf.mxu0  ;;  %v3586_v16 = vor.u32 %v4330_v5, %v3583_v11  ;;  %v3135_v8 = vld [vmem:[%s4862_s8 + $0x218] sm:$0xf0]  ;;  %v4282_v5 = vld [vmem:[%s4862_s8 + $0x40c] sm:$0xf] }
 0x145   : > { %2585 = vmatpush.bf16.msrb.mxu1 %v4030_v20  ;;  %v2367_v14 = vadd.f32 %v2366_v6, %v5428_v56  ;;  %v2379_v15 = vpop.f32.mrf.mxu1  ;;  %v4326_v20 = vld [vmem:[%s4862_s8 + $0x56c] sm:$0xf]  ;;  %v3314_v56 = vor.u32 %v4262_v13, %v3311_v17  ;;  %v3391_v6 = vld [vmem:[%s4862_s8 + $0x418] sm:$0xf0] }
 0x146   : > { %2598 = vmatpush.bf16.msrb.mxu2 %v2882_v21  ;;  %v3567_v21 = vld [vmem:[%s4862_s8 + $0x578] sm:$0xf0]  ;;  %v4438_v17 = vld [vmem:[%s4862_s8 + $0x8ec] sm:$0xf] }
 0x147   : > { %2611 = vmatpush.bf16.msrb.mxu3 %v3010_v24  ;;  %2573 = vmatmul.bf16.vlgmr.msrb.gmra.mxu0 %v5462_v52  ;;  %v2380_v22 = vadd.f32 %v2379_v15, %v2367_v14  ;;  %v3442_v24 = vor.u32 %v4294_v19, %v3439_v50  ;;  %v3570_v36 = vor.u32 %v4326_v20, %v3567_v21  ;;  %v3759_v13 = vld [vmem:[%s4862_s8 + $0x6f8] sm:$0xf0]  ;;  %v4406_v14 = vld [vmem:[%s4862_s8 + $0x7ec] sm:$0xf] }
 0x148   : > { %2617 = vmatpush.bf16.msra.mxu0 %v3250_v26  ;;  %2586 = vmatmul.bf16.vlgmr.msrb.gmra.mxu1 %v5468_v58  ;;  %v4226_v26 = vld [vmem:[%s4862_s8 + $0x24c] sm:$0xf]  ;;  %v4015_v19 = vld [vmem:[%s4862_s8 + $0x8f8] sm:$0xf0]  ;;  %v3394_v20 = vor.u32 %v4282_v5, %v3391_v6 }
 0x149   : > { %2630 = vmatpush.bf16.msra.mxu1 %v3378_v30  ;;  %2599 = vmatmul.bf16.vlgmr.msrb.gmra.mxu2 %v4975_v28  ;;  %v4298_v28 = vld [vmem:[%s4862_s8 + $0x48c] sm:$0xf]  ;;  %v3167_v30 = vld [vmem:[%s4862_s8 + $0x258] sm:$0xf0] }
 0x14a   : > { %2643 = vmatpush.bf16.msra.mxu2 %v3506_v33  ;;  %2612 = vmatmul.bf16.vlgmr.msrb.gmra.mxu3 %v4981_v34  ;;  %v3202_v34 = vor.u32 %v4234_v0, %v3199_v1  ;;  %v3458_v9 = vor.u32 %v4298_v28, %v3455_v4  ;;  %v4258_v33 = vld [vmem:[%s4862_s8 + $0x34c] sm:$0xf]  ;;  %v3263_v4 = vld [vmem:[%s4862_s8 + $0x318] sm:$0xf0] }
 0x14b   : > { %2656 = vmatpush.bf16.msra.mxu3 %v3634_v39  ;;  %v4290_v39 = vld [vmem:[%s4862_s8 + $0x44c] sm:$0xf]  ;;  %v3298_v48 = vor.u32 %v4258_v33, %v3295_v37  ;;  %v3743_v33 = vld [vmem:[%s4862_s8 + $0x6d8] sm:$0xf0] }
 0x14c   : > { %2618 = vmatpush.bf16.msra.mxu0 %v3234_v45  ;;  %v2392_v35 = vpop.f32.mrf.mxu2  ;;  %v3170_v45 = vor.u32 %v4226_v26, %v3167_v30  ;;  %v3426_v49 = vor.u32 %v4290_v39, %v3423_v41  ;;  %v4218_v1 = vld [vmem:[%s4862_s8 + $0x20c] sm:$0xf]  ;;  %v4018_v26 = vor.u32 %v4438_v17, %v4015_v19  ;;  %v3871_v37 = vld [vmem:[%s4862_s8 + $0x7d8] sm:$0xf0] }
 0x14d   : > { %2631 = vmatpush.bf16.msra.mxu1 %v3362_v46  ;;  %v2393_v42 = vadd.f32 %v2392_v35, %v2380_v22  ;;  %v2405_v40 = vpop.f32.mrf.mxu3  ;;  %v2381_v55 = vpop.f32.mrf.mxu1  ;;  %v4250_v28 = vld [vmem:[%s4862_s8 + $0x30c] sm:$0xf]  ;;  %v3138_v15 = vor.u32 %v4218_v1, %v3135_v8  ;;  %v4143_v22 = vld [vmem:[%s4862_s8 + $0x9f8] sm:$0xf0] }
 0x14e   : > { %2644 = vmatpush.bf16.msra.mxu2 %v3490_v47  ;;  %v2368_v47 = vpop.f32.mrf.mxu0  ;;  %v3266_v50 = vor.u32 %v4250_v28, %v3263_v4  ;;  %v4470_v21 = vld [vmem:[%s4862_s8 + $0x9ec] sm:$0xf]  ;;  %v3999_v41 = vld [vmem:[%s4862_s8 + $0x8d8] sm:$0xf0] }
 0x14f   : > { %2657 = vmatpush.bf16.msra.mxu3 %v3618_v53  ;;  %v5500_v46 = vadd.f32 %v2405_v40, %v2393_v42  ;;  %v3151_v53 = vld [vmem:[%s4862_s8 + $0x238] sm:$0xf0]  ;;  %v4370_v30 = vld [vmem:[%s4862_s8 + $0x6cc] sm:$0xf] }
 0x150   : > { %2619 = vmatpush.bf16.msra.mxu0 %v3218_v61  ;;  %v3407_v61 = vld [vmem:[%s4862_s8 + $0x438] sm:$0xf0]  ;;  %v3154_v0 = vor.u32 %v4222_v51, %v3151_v53  ;;  %v4402_v35 = vld [vmem:[%s4862_s8 + $0x7cc] sm:$0xf]  ;;  %v3746_v43 = vor.u32 %v4370_v30, %v3743_v33 }
 0x151   : > { %2632 = vmatpush.bf16.msra.mxu1 %v3346_v62  ;;  %v4318_v62 = vld [vmem:[%s4862_s8 + $0x52c] sm:$0xf]  ;;  %v3410_v3 = vor.u32 %v4286_v60, %v3407_v61  ;;  %v4127_v40 = vld [vmem:[%s4862_s8 + $0x9d8] sm:$0xf0]  ;;  %v3874_v44 = vor.u32 %v4402_v35, %v3871_v37 }
 0x152   : > { %2645 = vmatpush.bf16.msra.mxu2 %v3474_v63  ;;  %v3535_v63 = vld [vmem:[%s4862_s8 + $0x538] sm:$0xf0]  ;;  %v4434_v39 = vld [vmem:[%s4862_s8 + $0x8cc] sm:$0xf] }
 0x153   : > { %2658 = vmatpush.bf16.msra.mxu3 %v3602_v2  ;;  %v3282_v2 = vor.u32 %v4254_v54, %v3279_v59  ;;  %v4466_v42 = vld [vmem:[%s4862_s8 + $0x9cc] sm:$0xf]  ;;  %v3855_v53 = vld [vmem:[%s4862_s8 + $0x7b8] sm:$0xf0] }
 0x154   : > { %2620 = vmatpush.bf16.msra.mxu0 %v3202_v34  ;;  %v2394_v11 = vpop.f32.mrf.mxu2  ;;  %v3538_v34 = vor.u32 %v4318_v62, %v3535_v63  ;;  %v4366_v47 = vld [vmem:[%s4862_s8 + $0x6ac] sm:$0xf]  ;;  %v4130_v51 = vor.u32 %v4466_v42, %v4127_v40  ;;  %v3983_v55 = vld [vmem:[%s4862_s8 + $0x8b8] sm:$0xf0] }
 0x155   : > { %2633 = vmatpush.bf16.msra.mxu1 %v3330_v7  ;;  %v4314_v7 = vld [vmem:[%s4862_s8 + $0x50c] sm:$0xf]  ;;  %v2407_v10 = vpop.f32.mrf.mxu3  ;;  %v4111_v59 = vld [vmem:[%s4862_s8 + $0x9b8] sm:$0xf0] }
 0x156   : > { %2646 = vmatpush.bf16.msra.mxu2 %v3458_v9  ;;  %v3519_v9 = vld [vmem:[%s4862_s8 + $0x518] sm:$0xf0]  ;;  %v4430_v54 = vld [vmem:[%s4862_s8 + $0x8ac] sm:$0xf] }
 0x157   : > { %2659 = vmatpush.bf16.msra.mxu3 %v3586_v16  ;;  %v3887_v16 = vld [vmem:[%s4862_s8 + $0x7f8] sm:$0xf0]  ;;  %v3986_v61 = vor.u32 %v4430_v54, %v3983_v55  ;;  %v4362_v62 = vld [vmem:[%s4862_s8 + $0x68c] sm:$0xf] }
 0x158   : > { %2621 = vmatpush.bf16.msra.mxu0 %v3186_v23  ;;  %v3522_v23 = vor.u32 %v4314_v7, %v3519_v9  ;;  %v3711_v63 = vld [vmem:[%s4862_s8 + $0x698] sm:$0xf0]  ;;  %v4358_v6 = vld [vmem:[%s4862_s8 + $0x66c] sm:$0xf] }
 0x159   : > { %2634 = vmatpush.bf16.msra.mxu1 %v3314_v56  ;;  %v3762_v56 = vor.u32 %v4374_v12, %v3759_v13  ;;  %v3967_v8 = vld [vmem:[%s4862_s8 + $0x898] sm:$0xf0]  ;;  %v3714_v4 = vor.u32 %v4362_v62, %v3711_v63  ;;  %v4390_v9 = vld [vmem:[%s4862_s8 + $0x76c] sm:$0xf] }
 0x15a   : > { %2647 = vmatpush.bf16.msra.mxu2 %v3442_v24  ;;  %v3890_v24 = vor.u32 %v4406_v14, %v3887_v16  ;;  %v4095_v28 = vld [vmem:[%s4862_s8 + $0x998] sm:$0xf0]  ;;  %v4422_v14 = vld [vmem:[%s4862_s8 + $0x86c] sm:$0xf] }
 0x15b   : > { %2660 = vmatpush.bf16.msra.mxu3 %v3570_v36  ;;  %v4146_v36 = vor.u32 %v4470_v21, %v4143_v22  ;;  %v3695_v7 = vld [vmem:[%s4862_s8 + $0x678] sm:$0xf0]  ;;  %v4386_v22 = vld [vmem:[%s4862_s8 + $0x74c] sm:$0xf] }
 0x15c   : > { %2622 = vmatpush.bf16.msra.mxu0 %v3170_v45  ;;  %v4002_v45 = vor.u32 %v4434_v39, %v3999_v41  ;;  %v3823_v13 = vld [vmem:[%s4862_s8 + $0x778] sm:$0xf0]  ;;  %v3698_v17 = vor.u32 %v4358_v6, %v3695_v7  ;;  %v4346_v63 = vld [vmem:[%s4862_s8 + $0x60c] sm:$0xf]  ;;  %v4543_v6 = vld [vmem:[%s5275_s24] sm:$0xf] }
 0x15d   : > { %2635 = vmatpush.bf16.msra.mxu1 %v3298_v48  ;;  %v3727_v48 = vld [vmem:[%s4862_s8 + $0x6b8] sm:$0xf0]  ;;  %v3826_v19 = vor.u32 %v4390_v9, %v3823_v13  ;;  %v571_v7 = vperm.slane %v4543_v6, 2 }
 0x15e   : > { %2648 = vmatpush.bf16.msra.mxu2 %v3426_v49  ;;  %v4398_v49 = vld [vmem:[%s4862_s8 + $0x7ac] sm:$0xf]  ;;  %v3730_v60 = vor.u32 %v4366_v47, %v3727_v48  ;;  %v4079_v16 = vld [vmem:[%s4862_s8 + $0x978] sm:$0xf0] }
 0x15f   : > { %2661 = vmatpush.bf16.msra.mxu3 %v3554_v57  ;;  %v4462_v57 = vld [vmem:[%s4862_s8 + $0x9ac] sm:$0xf]  ;;  %v3679_v21 = vld [vmem:[%s4862_s8 + $0x658] sm:$0xf0] }
 0x160   : > { %2623 = vmatpush.bf16.msra.mxu0 %v3154_v0  ;;  %v4394_v0 = vld [vmem:[%s4862_s8 + $0x78c] sm:$0xf]  ;;  %v4114_v1 = vor.u32 %v4462_v57, %v4111_v59  ;;  %v3935_v30 = vld [vmem:[%s4862_s8 + $0x858] sm:$0xf0] }
 0x161   : > { %2636 = vmatpush.bf16.msra.mxu1 %v3282_v2  ;;  %v4063_v37 = vld [vmem:[%s4862_s8 + $0x958] sm:$0xf0]  ;;  %v4382_v48 = vld [vmem:[%s4862_s8 + $0x72c] sm:$0xf] }
 0x162   : > { %2649 = vmatpush.bf16.msra.mxu2 %v3410_v3  ;;  %v4458_v3 = vld [vmem:[%s4862_s8 + $0x98c] sm:$0xf]  ;;  %v3663_v47 = vld [vmem:[%s4862_s8 + $0x638] sm:$0xf0] }
 0x163   : > { %2662 = vmatpush.bf16.msra.mxu3 %v3538_v34  ;;  %v4098_v10 = vor.u32 %v4458_v3, %v4095_v28  ;;  %v3919_v54 = vld [vmem:[%s4862_s8 + $0x838] sm:$0xf0]  ;;  %v4446_v57 = vld [vmem:[%s4862_s8 + $0x92c] sm:$0xf] }
 0x164   : > { %2624 = vmatpush.bf16.msra.mxu0 %v3138_v15  ;;  %v2418_v2 = vpop.f32.mrf.mxu0  ;;  %v4454_v15 = vld [vmem:[%s4862_s8 + $0x96c] sm:$0xf]  ;;  %v4047_v59 = vld [vmem:[%s4862_s8 + $0x938] sm:$0xf0] }
 0x165   : > { %2637 = vmatpush.bf16.msra.mxu1 %v3266_v50  ;;  %v2431_v5 = vpop.f32.mrf.mxu1  ;;  %v4442_v28 = vld [vmem:[%s4862_s8 + $0x90c] sm:$0xf] }
 0x166   : > { %2650 = vmatpush.bf16.msra.mxu2 %v3394_v20  ;;  %v4354_v20 = vld [vmem:[%s4862_s8 + $0x64c] sm:$0xf] }
 0x167   : > { %2663 = vmatpush.bf16.msra.mxu3 %v3522_v23  ;;  %2625 = vmatmul.bf16.vlgmr.msra.gmra.mxu0 %v4973_v27  ;;  %v3839_v27 = vld [vmem:[%s4862_s8 + $0x798] sm:$0xf0]  ;;  %v4082_v23 = vor.u32 %v4454_v15, %v4079_v16  ;;  %v3682_v41 = vor.u32 %v4354_v20, %v3679_v21 }
 0x168   : > { %2669 = vmatpush.bf16.msrb.mxu0 %v3762_v56  ;;  %2638 = vmatmul.bf16.vlgmr.msra.gmra.mxu1 %v4977_v29  ;;  %v2419_v29 = vadd.f32 %v2418_v2, %v5500_v46  ;;  %v3842_v11 = vor.u32 %v4394_v0, %v3839_v27  ;;  %v3951_v46 = vld [vmem:[%s4862_s8 + $0x878] sm:$0xf0]  ;;  %v4050_v27 = vor.u32 %v4446_v57, %v4047_v59 }
 0x169   : > { %2682 = vmatpush.bf16.msrb.mxu1 %v3890_v24  ;;  %2651 = vmatmul.bf16.vlgmr.msra.gmra.mxu2 %v5027_v31  ;;  %v3858_v31 = vor.u32 %v4398_v49, %v3855_v53  ;;  %v3954_v50 = vor.u32 %v4422_v14, %v3951_v46  ;;  %v3807_v24 = vld [vmem:[%s4862_s8 + $0x758] sm:$0xf0]  ;;  %v4414_v53 = vld [vmem:[%s4862_s8 + $0x82c] sm:$0xf] }
 0x16a   : > { %2695 = vmatpush.bf16.msrb.mxu2 %v4018_v26  ;;  %2664 = vmatmul.bf16.vlgmr.msra.gmra.mxu3 %v5033_v38  ;;  %v4426_v38 = vld [vmem:[%s4862_s8 + $0x88c] sm:$0xf]  ;;  %v2432_v12 = vadd.f32 %v2431_v5, %v2419_v29  ;;  %v3922_v62 = vor.u32 %v4414_v53, %v3919_v54  ;;  %v3647_v0 = vld [vmem:[%s4862_s8 + $0x618] sm:$0xf0] }
 0x16b   : > { %2708 = vmatpush.bf16.msrb.mxu3 %v4146_v36  ;;  %v3970_v34 = vor.u32 %v4426_v38, %v3967_v8  ;;  %v4418_v26 = vld [vmem:[%s4862_s8 + $0x84c] sm:$0xf]  ;;  %v3775_v38 = vld [vmem:[%s4862_s8 + $0x718] sm:$0xf0] }
 0x16c   : > { %2670 = vmatpush.bf16.msrb.mxu0 %v3746_v43  ;;  %v2444_v56 = vpop.f32.mrf.mxu2  ;;  %v4450_v36 = vld [vmem:[%s4862_s8 + $0x94c] sm:$0xf]  ;;  %v2420_v39 = vpop.f32.mrf.mxu0  ;;  %v3810_v43 = vor.u32 %v4386_v22, %v3807_v24  ;;  %v3903_v2 = vld [vmem:[%s4862_s8 + $0x818] sm:$0xf0] }
 0x16d   : > { %2683 = vmatpush.bf16.msrb.mxu1 %v3874_v44  ;;  %v2445_v33 = vadd.f32 %v2444_v56, %v2432_v12  ;;  %v2457_v35 = vpop.f32.mrf.mxu3  ;;  %v2433_v42 = vpop.f32.mrf.mxu1  ;;  %v3938_v44 = vor.u32 %v4418_v26, %v3935_v30  ;;  %v4066_v49 = vor.u32 %v4450_v36, %v4063_v37  ;;  %v4410_v8 = vld [vmem:[%s4862_s8 + $0x80c] sm:$0xf]  ;;  %v4031_v29 = vld [vmem:[%s4862_s8 + $0x918] sm:$0xf0] }
 0x16e   : > { %2696 = vmatpush.bf16.msrb.mxu2 %v4002_v45  ;;  %v4350_v45 = vld [vmem:[%s4862_s8 + $0x62c] sm:$0xf] }
 0x16f   : > { %2709 = vmatpush.bf16.msrb.mxu3 %v4130_v51  ;;  %v2458_v40 = vadd.f32 %v2457_v35, %v2445_v33  ;;  %v3791_v51 = vld [vmem:[%s4862_s8 + $0x738] sm:$0xf0] }
 0x170   : > { %2671 = vmatpush.bf16.msrb.mxu0 %v3730_v60  ;;  %v3666_v60 = vor.u32 %v4350_v45, %v3663_v47 }
 0x171   : > { %2684 = vmatpush.bf16.msrb.mxu1 %v3858_v31  ;;  %v2725_v55 = vrot.slane %v2458_v40, 6 }
 0x172   : > { %2697 = vmatpush.bf16.msrb.mxu2 %v3986_v61  ;;  %v3794_v61 = vor.u32 %v4382_v48, %v3791_v51 }
 0x173   : > { %2710 = vmatpush.bf16.msrb.mxu3 %v4114_v1  ;;  %v5581_v31 = vsel %vm2728_vm0, %v5409_v18, %v2725_v55  ;;  %v4378_v1 = vld [vmem:[%s4862_s8 + $0x70c] sm:$0xf]  ;;  %v3650_v18 = vor.u32 %v4346_v63, %v3647_v0 }
 0x174   : > { %2672 = vmatpush.bf16.msrb.mxu0 %v3714_v4  ;;  %v2446_v3 = vpop.f32.mrf.mxu2  ;;  %v3778_v5 = vor.u32 %v4378_v1, %v3775_v38 }
 0x175   : > { %2685 = vmatpush.bf16.msrb.mxu1 %v3842_v11  ;;  %v2459_v4 = vpop.f32.mrf.mxu3  ;;  %v3906_v11 = vor.u32 %v4410_v8, %v3903_v2 }
 0x176   : > { %2698 = vmatpush.bf16.msrb.mxu2 %v3970_v34  ;;  %v4034_v34 = vor.u32 %v4442_v28, %v4031_v29 }
 0x177   : > { %2711 = vmatpush.bf16.msrb.mxu3 %v4098_v10 }
 0x178   : > { %2673 = vmatpush.bf16.msrb.mxu0 %v3698_v17 }
 0x179   : > { %2686 = vmatpush.bf16.msrb.mxu1 %v3826_v19 }
 0x17a   : > { %2699 = vmatpush.bf16.msrb.mxu2 %v3954_v50 }
 0x17b   : > { %2712 = vmatpush.bf16.msrb.mxu3 %v4082_v23 }
 0x17c   : > { %2674 = vmatpush.bf16.msrb.mxu0 %v3682_v41 }
 0x17d   : > { %2687 = vmatpush.bf16.msrb.mxu1 %v3810_v43 }
 0x17e   : > { %2700 = vmatpush.bf16.msrb.mxu2 %v3938_v44 }
 0x17f   : > { %2713 = vmatpush.bf16.msrb.mxu3 %v4066_v49  ;;  %v572_v49 = vperm.slane %v4543_v6, 3 }
 0x180   : > { %2675 = vmatpush.bf16.msrb.mxu0 %v3666_v60 }
 0x181   : > { %2688 = vmatpush.bf16.msrb.mxu1 %v3794_v61 }
 0x182   : > { %2701 = vmatpush.bf16.msrb.mxu2 %v3922_v62 }
 0x183   : > { %2714 = vmatpush.bf16.msrb.mxu3 %v4050_v27 }
 0x184   : > { %2676 = vmatpush.bf16.msrb.mxu0 %v3650_v18  ;;  %v2470_v9 = vpop.f32.mrf.mxu0 }
 0x185   : > { %2689 = vmatpush.bf16.msrb.mxu1 %v3778_v5  ;;  %v2471_v10 = vadd.f32 %v2470_v9, %v571_v7  ;;  %v2483_v12 = vpop.f32.mrf.mxu1 }
 0x186   : > { %2702 = vmatpush.bf16.msrb.mxu2 %v3906_v11 }
 0x187   : > { %2715 = vmatpush.bf16.msrb.mxu3 %v4034_v34  ;;  %2677 = vmatmul.bf16.vlgmr.msrb.gmra.mxu0 %v5024_v25  ;;  %v2484_v13 = vadd.f32 %v2483_v12, %v2471_v10 }
 0x188   : > { %2690 = vmatmul.bf16.vlgmr.msrb.gmra.mxu1 %v5029_v32 }
 0x189   : > { %2703 = vmatmul.bf16.vlgmr.msrb.gmra.mxu2 %v5462_v52 }
 0x18a   : > { %2716 = vmatmul.bf16.vlgmr.msrb.gmra.mxu3 %v5468_v58 }
 0x18c   : > { %v2496_v14 = vpop.f32.mrf.mxu2  ;;  %v2472_v17 = vpop.f32.mrf.mxu0 }
 0x18d   : > { %v2497_v46 = vadd.f32 %v2496_v14, %v2484_v13  ;;  %v2509_v15 = vpop.f32.mrf.mxu3  ;;  %v2485_v19 = vpop.f32.mrf.mxu1 }
 0x18f   : > { %v2510_v16 = vadd.f32 %v2509_v15, %v2497_v46 }
 0x194   : > { %v2498_v50 = vpop.f32.mrf.mxu2 }
 0x195   : > { %v2511_v25 = vpop.f32.mrf.mxu3 }
 0x1a4   : > { %v2522_v20 = vpop.f32.mrf.mxu0 }
 0x1a5   : > { %v2523_v32 = vadd.f32 %v2522_v20, %v2510_v16  ;;  %v2535_v21 = vpop.f32.mrf.mxu1 }
 0x1a7   : > { %v2536_v52 = vadd.f32 %v2535_v21, %v2523_v32 }
 0x1ac   : > { %v2548_v22 = vpop.f32.mrf.mxu2  ;;  %v2524_v24 = vpop.f32.mrf.mxu0 }
 0x1ad   : > { %v2549_v58 = vadd.f32 %v2548_v22, %v2536_v52  ;;  %v2561_v23 = vpop.f32.mrf.mxu3  ;;  %v2537_v26 = vpop.f32.mrf.mxu1 }
 0x1af   : > { %v2562_v56 = vadd.f32 %v2561_v23, %v2549_v58 }
 0x1b4   : > { %v2550_v30 = vpop.f32.mrf.mxu2 }
 0x1b5   : > { %v2563_v33 = vpop.f32.mrf.mxu3 }
 0x1c4   : > { %v2574_v35 = vpop.f32.mrf.mxu0 }
 0x1c5   : > { %v2575_v36 = vadd.f32 %v2574_v35, %v2562_v56  ;;  %v2587_v37 = vpop.f32.mrf.mxu1 }
 0x1c7   : > { %v2588_v39 = vadd.f32 %v2587_v37, %v2575_v36 }
 0x1c9   : > { %v2726_v11 = vrot.slane %v2588_v39, 4 }
 0x1cc   : > { %v2600_v41 = vpop.f32.mrf.mxu2  ;;  %v2576_v40 = vpop.f32.mrf.mxu0 }
 0x1cd   : > { %v2613_v42 = vpop.f32.mrf.mxu3  ;;  %v2589_v43 = vpop.f32.mrf.mxu1  ;;  %v2601_v54 = vadd.f32 %v2600_v41, %v572_v49 }
 0x1cf   : > { %v2614_v59 = vadd.f32 %v2613_v42, %v2601_v54 }
 0x1d4   : > { %v2602_v44 = vpop.f32.mrf.mxu2 }
 0x1d5   : > { %v2615_v45 = vpop.f32.mrf.mxu3 }
 0x1e4   : > { %v2626_v47 = vpop.f32.mrf.mxu0 }
 0x1e5   : > { %v2639_v48 = vpop.f32.mrf.mxu1  ;;  %v2627_v62 = vadd.f32 %v2626_v47, %v2614_v59 }
 0x1e7   : > { %v2640_v63 = vadd.f32 %v2639_v48, %v2627_v62 }
 0x1ec   : > { %v2652_v51 = vpop.f32.mrf.mxu2  ;;  %v2628_v55 = vpop.f32.mrf.mxu0 }
 0x1ed   : > { %v2665_v53 = vpop.f32.mrf.mxu3  ;;  %v2641_v57 = vpop.f32.mrf.mxu1  ;;  %v2653_v0 = vadd.f32 %v2652_v51, %v2640_v63 }
 0x1ef   : > { %v2666_v1 = vadd.f32 %v2665_v53, %v2653_v0 }
 0x1f4   : > { %v2654_v60 = vpop.f32.mrf.mxu2 }
 0x1f5   : > { %v2667_v61 = vpop.f32.mrf.mxu3 }
 0x204   : > { %v2678_v27 = vpop.f32.mrf.mxu0 }
 0x205   : > { %v2691_v38 = vpop.f32.mrf.mxu1  ;;  %v2679_v8 = vadd.f32 %v2678_v27, %v2666_v1 }
 0x207   : > { %v2692_v2 = vadd.f32 %v2691_v38, %v2679_v8 }
 0x20c   : > { %v2704_v3 = vpop.f32.mrf.mxu2  ;;  %v2680_v4 = vpop.f32.mrf.mxu0 }
 0x20d   : > { %v2705_v28 = vadd.f32 %v2704_v3, %v2692_v2  ;;  %v2717_v29 = vpop.f32.mrf.mxu3  ;;  %v2693_v18 = vpop.f32.mrf.mxu1 }
 0x20f   : > { %v2718_v5 = vadd.f32 %v2717_v29, %v2705_v28 }
 0x211   : > { %v2727_v34 = vrot.slane %v2718_v5, 2 }
 0x213   : > { %v2731_v6 = vsel %vm2730_vm1, %v2726_v11, %v2727_v34 }
 0x214   : > { %v2733_v7 = vsel %vm2732_vm2, %v5581_v31, %v2731_v6  ;;  %v2706_v9 = vpop.f32.mrf.mxu2 }
 0x215   : > { %v2719_v10 = vpop.f32.mrf.mxu3  ;;  %2735 = vst [vmem:[%s241_s23] sm:$0xff] %v2733_v7 }
 0x216   : > { %4661 = shalt.err (!%p4658_p5)
}
 0x217   : > { %4484 = dma.vmem_to_hbm [thread:$0]  (%p4813_p11), %s2751_s21, 128, %s2753_s28, %s2737_s22  }
 0x218 PF: > { %s2764_s30 = sand.u32 1, %s4692_s12   ;;  %p5642_p7 = scmp.ge.s32.totalorder %s4704_s15, 2 }
 0x219   : > { %s2765_s8 = scalar_lea.sflag [#allocation4], %s2764_s30 }
 0x21a   : > { %p4498_p9 = pnand %p5642_p7, %p4817_p12 }
 0x21c   : > { %p4499_p13 = pneg %p4498_p9 }
 0x21e   : > { %4687 = dma.done.wait (%p4499_p13), %s2765_s8, 128  }
 0x21f   : > { %4689 = vsyncadd (%p4499_p13), %s2765_s8, 4294967168  ;;  %p17_p0 = scmp.ge.s32.totalorder %s4751_s16, 4   ;;  %s5643_s12 = smov %s4696_s13 }
 0x220   : > { %s5644_s13 = smov %s4700_s14  ;;  %s5645_s14 = smov %s4762_s19 }
 0x221   : > { %s5646_s15 = smov %s4751_s16  ;;  %19 = sbr.rel (!%p17_p0) target bundleno = 8 (0x8), region = 93 }
 0x226   :  { %2771 = vsyncpa [#allocation3], 1 }
 0x227   :  { %2773 = vsyncpa [#allocation3 + $0x1], 1 }
 0x228   :  { %2774 = vsyncpa [#allocation6], 1 }
 0x229   :  { %2776 = vsyncpa [#allocation6 + $0x1], 1 }
 0x22a   :  { %2777 = vsyncpa [#allocation4], 1 }
 0x22b   :  { %2779 = vsyncpa [#allocation4 + $0x1], 1 }

</bundles_post_ra>
